<compile_context>
chip_gen: v6e
topology: v6e:2x2x1
jax: 0.10.0
libtpu: 0.0.40
codegen_flags: <defaults>
</compile_context>

<pallas_src>
import functools

import jax
import jax.numpy as jnp
from jax.experimental import pallas as pl
from jax.experimental.pallas import tpu as pltpu

LN_EPS = 1e-5  # PyTorch nn.LayerNorm default


def _layernorm(x, g, b):
    mu = jnp.mean(x, axis=-1, keepdims=True)
    var = jnp.mean((x - mu) ** 2, axis=-1, keepdims=True)
    return (x - mu) * jax.lax.rsqrt(var + LN_EPS) * g + b


def _attention_context(q, k, v, *, groups, tokens, heads, dim_head):
    """(TM, inner) f32 q/k/v -> (TM, inner) f32 multi-head attention context.

    Fast path: fold heads into the einsum batch axis using only row-major-
    preserving reshapes + minor (last-two-dim) transposes, so all heads run
    in a single batched QK^T / PV pair of matmuls (no per-head slice/concat).
    """
    TB, N, H, DH = groups, tokens, heads, dim_head
    TM = TB * N
    inner = H * DH

    if DH % 8 == 0 or H == 1:
        def to_tokens_minor(t):                      # (TM, inner) -> (TB*H, DH, N)
            t = t.reshape(TB, N, inner)              # split sublane dim (row-major)
            t = jnp.swapaxes(t, -1, -2)              # (TB, inner, N) minor transpose
            return t.reshape(TB * H, DH, N)          # split sublanes on head bound

        q_h = jnp.swapaxes(to_tokens_minor(q), -1, -2).astype(jnp.bfloat16)  # (BH,N,DH)
        k_t = to_tokens_minor(k).astype(jnp.bfloat16)                        # (BH,DH,N)
        v_t = to_tokens_minor(v).astype(jnp.bfloat16)                        # (BH,DH,N)

        dots = jnp.einsum("bnd,bdm->bnm", q_h, k_t,
                          preferred_element_type=jnp.float32)                # (BH,N,N)
        dots = dots - jnp.max(dots, axis=-1, keepdims=True)
        e = jnp.exp(dots)
        attn = (e * pl.reciprocal(jnp.sum(e, axis=-1, keepdims=True),
                                  approx=True)).astype(jnp.bfloat16)
        ctx_t = jnp.einsum("bdm,bnm->bdn", v_t, attn,
                           preferred_element_type=jnp.float32)               # (BH,DH,N)
        ctx = jnp.swapaxes(ctx_t.reshape(TB, inner, N), -1, -2)              # (TB,N,inner)
        return ctx.reshape(TM, inner)

    # Fallback for head sizes that do not split on a sublane boundary:
    # per-head static slices (more relayout copies, but always lowers).
    parts = []
    for h in range(H):
        sl = slice(h * DH, (h + 1) * DH)
        q_h = q[:, sl].astype(jnp.bfloat16).reshape(TB, N, DH)
        k_h = k[:, sl].astype(jnp.bfloat16).reshape(TB, N, DH)
        v_h = v[:, sl].astype(jnp.bfloat16).reshape(TB, N, DH)
        d_h = jnp.einsum("bnd,bmd->bnm", q_h, k_h, preferred_element_type=jnp.float32)
        d_h = d_h - jnp.max(d_h, axis=-1, keepdims=True)
        e_h = jnp.exp(d_h)
        a_h = (e_h * pl.reciprocal(jnp.sum(e_h, axis=-1, keepdims=True),
                                   approx=True)).astype(jnp.bfloat16)
        c_h = jnp.einsum("bnm,bmd->bnd", a_h, v_h, preferred_element_type=jnp.float32)
        parts.append(c_h.reshape(TM, DH))
    return jnp.concatenate(parts, axis=-1)


def _transformer_layer_kernel(
    x_ref,
    g1_ref, be1_ref, wq_ref, wk_ref, wv_ref, wo_ref, bo_ref,
    g2_ref, be2_ref, w1_ref, b1_ref, w2_ref, b2_ref,
    o_ref, acc_ref,
    *, heads, dim_head, tokens,
):
    layer = pl.program_id(1)
    TM, _ = x_ref.shape
    TB = TM // tokens

    @pl.when(layer == 0)
    def _():
        acc_ref[...] = x_ref[...].astype(jnp.float32)

    x = acc_ref[...]                                  # (TM, D) f32 residual stream

    # ----- PreNorm + Attention + residual -----
    y = _layernorm(x, g1_ref[...], be1_ref[...]).astype(jnp.bfloat16)
    q = jnp.dot(y, wq_ref[...], preferred_element_type=jnp.float32)  # scale folded into Wq
    k = jnp.dot(y, wk_ref[...], preferred_element_type=jnp.float32)
    v = jnp.dot(y, wv_ref[...], preferred_element_type=jnp.float32)
    ctx = _attention_context(q, k, v, groups=TB, tokens=tokens,
                             heads=heads, dim_head=dim_head)
    attn_out = jnp.dot(ctx.astype(jnp.bfloat16), wo_ref[...],
                       preferred_element_type=jnp.float32) + bo_ref[...]
    x = x + attn_out

    # ----- PreNorm + FeedForward (SiLU) + residual -----
    z = _layernorm(x, g2_ref[...], be2_ref[...]).astype(jnp.bfloat16)
    h = jnp.dot(z, w1_ref[...], preferred_element_type=jnp.float32) + b1_ref[...]
    h = h * pl.reciprocal(1.0 + jnp.exp(-h), approx=True)            # SiLU via EUP recip
    ff_out = jnp.dot(h.astype(jnp.bfloat16), w2_ref[...],
                     preferred_element_type=jnp.float32) + b2_ref[...]
    x = x + ff_out

    acc_ref[...] = x

    @pl.when(layer == pl.num_programs(1) - 1)
    def _():
        o_ref[...] = x.astype(o_ref.dtype)


# ---------------------------------------------------------------------------
# Wrapper-side parameter prep, tiling policy and pallas_call
# ---------------------------------------------------------------------------
def _prepare_params(params, heads, dim_head):
    """Split Wqkv into Wq/Wk/Wv, fold the attention scale into Wq, cast the
    big matrices to bf16 and stack every field along a leading depth axis."""
    inner = heads * dim_head
    scale = dim_head ** -0.5
    cols = [[] for _ in range(13)]
    for (g1, be1, wqkv, wout, bout, g2, be2, w1, b1, w2, b2) in params:
        wq = (wqkv[:, :inner] * scale).astype(jnp.bfloat16)
        wk = wqkv[:, inner:2 * inner].astype(jnp.bfloat16)
        wv = wqkv[:, 2 * inner:].astype(jnp.bfloat16)
        layer = (g1, be1, wq, wk, wv,
                 wout.astype(jnp.bfloat16), bout,
                 g2, be2,
                 w1.astype(jnp.bfloat16), b1,
                 w2.astype(jnp.bfloat16), b2)
        for c, t in zip(cols, layer):
            c.append(t)
    return [jnp.stack(c) for c in cols]


def _weight_spec(w):
    ndim = w.ndim
    return pl.BlockSpec(
        (None,) + tuple(w.shape[1:]),                    # squeeze the depth axis
        lambda i, l, _nd=ndim: (l,) + (0,) * (_nd - 1),  # select layer l's block
    )


def _vmem_budget_bytes():
    # Conservative fallback = smallest generation (v7x: 64 MiB / TC).
    cap = 64 * 1024 * 1024
    try:
        cap = int(pltpu.get_tpu_info().vmem_capacity_bytes)
    except Exception:
        pass
    # Leave headroom for Mosaic internal scratch: ~48 MiB on v7x, ~96 MiB on v5e/v6e.
    return max(32 * 1024 * 1024, min(int(cap * 0.75), 100 * 1024 * 1024))


def _fixed_weight_bytes(D, inner, mlp):
    big = (3 * D * inner + inner * D + D * mlp + mlp * D) * 2   # bf16 matrices
    small = (6 * D + mlp) * 4                                   # f32 LN params / biases
    return 2 * (big + small)                                    # double-buffered


def _per_row_bytes(D, inner, mlp, heads, N, io_itemsize):
    # Generous per-row VMEM model: double-buffered x/o tiles, residual scratch,
    # LN/attention/FF intermediates (+ bf16 relayout copies).
    return (
        2 * D * io_itemsize        # x tile (double-buffered)
        + 2 * D * io_itemsize      # out tile (double-buffered)
        + D * 4                    # residual scratch
        + 4 * D * 4                # layernorm temps / attn_out / ff_out
        + 6 * inner * 4            # q, k, v (+ relayout copies), ctx
        + 3 * heads * N * 4        # dots / exp / attn
        + 3 * mlp * 4              # h1 (f32) + SiLU + bf16 cast
    )


def _pick_block_rows(M, N, per_row_bytes, fixed_bytes, budget_bytes, max_rows=2048):
    """Largest legal TM (whole attention groups, divides M, sublane-friendly)
    that fits the VMEM budget, preferring MXU-aligned sizes (256/128) and
    >=2 row blocks so both v7x TensorCores stay busy."""
    cands = []
    for tb in range(1, M // N + 1):
        tm = tb * N
        if M % tm != 0:
            continue
        if tm % 8 != 0 and tm != M:
            continue
        if fixed_bytes + tm * per_row_bytes <= budget_bytes:
            cands.append(tm)
    if not cands:
        # Fail loudly instead of silently compiling a block that overflows the
        # scoped VMEM limit (this bites first on v7x's 64 MiB).
        # TODO(synk): pad M with dummy attention groups instead of raising.
        raise ValueError(
            "Transformer row block does not fit in the VMEM budget; "
            "reduce dim/mlp_dim or raise the budget.")
    small_enough = [t for t in cands if t <= max_rows] or cands

    def align_rank(tm):
        if tm % 256 == 0:
            return 2   # v6e / v7x MXU M-tile
        if tm % 128 == 0:
            return 1   # v5e MXU M-tile
        return 0

    return max(small_enough, key=lambda tm: (M // tm >= 2, align_rank(tm), tm))


def transformer_forward(x, params, *, heads, dim_head, max_block_rows=2048):
    """x: (B, P, N, D) -> (B, P, N, D), matching the PyTorch Transformer.forward."""
    B, P, N, D = x.shape
    M = B * P * N
    depth = len(params)
    inner = heads * dim_head
    assert params[0][2].shape[1] == 3 * inner, "Wqkv width mismatch with heads*dim_head"
    mlp = params[0][7].shape[1]

    x_flat = x.reshape(M, D)
    stacked = _prepare_params(params, heads, dim_head)

    budget = _vmem_budget_bytes()
    TM = _pick_block_rows(
        M, N,
        per_row_bytes=_per_row_bytes(D, inner, mlp, heads, N, jnp.dtype(x.dtype).itemsize),
        fixed_bytes=_fixed_weight_bytes(D, inner, mlp),
        budget_bytes=budget,
        max_rows=max_block_rows,
    )
    grid = (M // TM, depth)

    kernel = functools.partial(
        _transformer_layer_kernel, heads=heads, dim_head=dim_head, tokens=N)

    in_specs = [pl.BlockSpec((TM, D), lambda i, l: (i, 0))]
    in_specs += [_weight_spec(w) for w in stacked]

    out = pl.pallas_call(
        kernel,
        out_shape=jax.ShapeDtypeStruct((M, D), x.dtype),
        grid_spec=pltpu.PrefetchScalarGridSpec(
            num_scalar_prefetch=0,
            grid=grid,
            in_specs=in_specs,
            out_specs=pl.BlockSpec((TM, D), lambda i, l: (i, 0)),
            scratch_shapes=[pltpu.VMEM((TM, D), jnp.float32)],   # residual stream
        ),
        compiler_params=pltpu.CompilerParams(
            dimension_semantics=("parallel", "arbitrary"),
            vmem_limit_bytes=budget,
        ),
    )(x_flat, *stacked)
    return out.reshape(B, P, N, D)


def init_transformer_params(key, dim, depth, heads, dim_head, mlp_dim):
    inner = heads * dim_head
    params = []
    for _ in range(depth):
        keys = jax.random.split(key, 5)
        key = keys[0]
        layer = (
            jnp.ones((1, dim), jnp.float32),                                   # ln1 gamma
            jnp.zeros((1, dim), jnp.float32),                                  # ln1 beta
            jax.random.normal(keys[1], (dim, 3 * inner), jnp.float32) * 0.05,  # Wqkv (no bias)
            jax.random.normal(keys[2], (inner, dim), jnp.float32) * 0.05,      # Wout
            jnp.zeros((1, dim), jnp.float32),                                  # bout
            jnp.ones((1, dim), jnp.float32),                                   # ln2 gamma
            jnp.zeros((1, dim), jnp.float32),                                  # ln2 beta
            jax.random.normal(keys[3], (dim, mlp_dim), jnp.float32) * 0.05,    # W1
            jnp.zeros((1, mlp_dim), jnp.float32),                              # b1
            jax.random.normal(keys[4], (mlp_dim, dim), jnp.float32) * 0.05,    # W2
            jnp.zeros((1, dim), jnp.float32),                                  # b2
        )
        params.append(layer)
    return params


# ---------------- pure-JAX reference (for validation only) ----------------
def _ref_forward(x, params, *, heads, dim_head):
    B, P, N, D = x.shape
    inner = heads * dim_head
    scale = dim_head ** -0.5
    xf = x.reshape(B * P, N, D)
    for (g1, b1_, wqkv, wout, bout, g2, b2_, w1, bb1, w2, bb2) in params:
        y = _layernorm(xf, g1, b1_)
        qkv = y @ wqkv
        q, k, v = qkv[..., :inner], qkv[..., inner:2 * inner], qkv[..., 2 * inner:]

        def split_heads(t):
            return t.reshape(B * P, N, heads, dim_head).transpose(0, 2, 1, 3)

        qh, kh, vh = split_heads(q), split_heads(k), split_heads(v)
        dots = jnp.einsum("bhnd,bhmd->bhnm", qh, kh) * scale
        attn = jax.nn.softmax(dots, axis=-1)
        out = jnp.einsum("bhnm,bhmd->bhnd", attn, vh)
        out = out.transpose(0, 2, 1, 3).reshape(B * P, N, inner)
        out = out @ wout + bout
        xf = xf + out
        z = _layernorm(xf, g2, b2_)
        h = z @ w1 + bb1
        h = h * jax.nn.sigmoid(h)
        xf = xf + (h @ w2 + bb2)
    return xf.reshape(B, P, N, D)


if __name__ == "__main__":
    # small shapes consistent with the module: x is (B, P, N, dim)
    B, P, N = 2, 2, 8
    dim, depth, heads, dim_head, mlp_dim = 32, 2, 4, 8, 64

    key = jax.random.PRNGKey(0)
    kx, kp = jax.random.split(key)
    x = jax.random.normal(kx, (B, P, N, dim), jnp.float32)
    params = init_transformer_params(kp, dim, depth, heads, dim_head, mlp_dim)

    out = transformer_forward(x, params, heads=heads, dim_head=dim_head)
    out = jax.block_until_ready(out)

    ref = _ref_forward(x, params, heads=heads, dim_head=dim_head)
    assert out.shape == (B, P, N, dim)
    assert jnp.allclose(out, ref, rtol=2e-2, atol=2e-2), "mismatch vs reference"

    print("KERNEL_OK")
</pallas_src>

<mosaic_0001>
module attributes {stable_mosaic.version = 11 : i64} {
  func.func @_transformer_layer_kernel(%arg0: i32, %arg1: i32, %arg2: memref<16x32xf32, #tpu.memory_space<vmem>>, %arg3: memref<1x1x32xf32, #tpu.memory_space<vmem>>, %arg4: memref<1x1x32xf32, #tpu.memory_space<vmem>>, %arg5: memref<1x32x32xbf16, #tpu.memory_space<vmem>>, %arg6: memref<1x32x32xbf16, #tpu.memory_space<vmem>>, %arg7: memref<1x32x32xbf16, #tpu.memory_space<vmem>>, %arg8: memref<1x32x32xbf16, #tpu.memory_space<vmem>>, %arg9: memref<1x1x32xf32, #tpu.memory_space<vmem>>, %arg10: memref<1x1x32xf32, #tpu.memory_space<vmem>>, %arg11: memref<1x1x32xf32, #tpu.memory_space<vmem>>, %arg12: memref<1x32x64xbf16, #tpu.memory_space<vmem>>, %arg13: memref<1x1x64xf32, #tpu.memory_space<vmem>>, %arg14: memref<1x64x32xbf16, #tpu.memory_space<vmem>>, %arg15: memref<1x1x32xf32, #tpu.memory_space<vmem>>, %arg16: memref<16x32xf32, #tpu.memory_space<vmem>>, %arg17: memref<16x32xf32, #tpu.memory_space<vmem>>) attributes {dimension_semantics = [#tpu.dimension_semantics<parallel>, #tpu.dimension_semantics<arbitrary>], iteration_bounds = array<i64: 2, 2>, scalar_prefetch = 0 : i64, scratch_operands = 1 : i64, tpu.core_type = #tpu.core_type<tc>, window_params = [{transform_indices = @transform_0, window_bounds = array<i64: 16, 32>}, {transform_indices = @transform_1, window_bounds = array<i64: 1, 1, 32>}, {transform_indices = @transform_2, window_bounds = array<i64: 1, 1, 32>}, {transform_indices = @transform_3, window_bounds = array<i64: 1, 32, 32>}, {transform_indices = @transform_4, window_bounds = array<i64: 1, 32, 32>}, {transform_indices = @transform_5, window_bounds = array<i64: 1, 32, 32>}, {transform_indices = @transform_6, window_bounds = array<i64: 1, 32, 32>}, {transform_indices = @transform_7, window_bounds = array<i64: 1, 1, 32>}, {transform_indices = @transform_8, window_bounds = array<i64: 1, 1, 32>}, {transform_indices = @transform_9, window_bounds = array<i64: 1, 1, 32>}, {transform_indices = @transform_10, window_bounds = array<i64: 1, 32, 64>}, {transform_indices = @transform_11, window_bounds = array<i64: 1, 1, 64>}, {transform_indices = @transform_12, window_bounds = array<i64: 1, 64, 32>}, {transform_indices = @transform_13, window_bounds = array<i64: 1, 1, 32>}, {transform_indices = @transform_14, window_bounds = array<i64: 16, 32>}]} {
    %c0_i32 = arith.constant 0 : i32
    %0 = arith.cmpi eq, %arg1, %c0_i32 : i32
    %1 = arith.extui %0 : i1 to i32
    %c0_i32_0 = arith.constant 0 : i32
    %2 = arith.cmpi ne, %1, %c0_i32_0 : i32
    scf.if %2 {
      %c0_65 = arith.constant 0 : index
      %c0_66 = arith.constant 0 : index
      %132 = vector.load %arg2[%c0_65, %c0_66] : memref<16x32xf32, #tpu.memory_space<vmem>>, vector<16x32xf32>
      %c0_67 = arith.constant 0 : index
      %c0_68 = arith.constant 0 : index
      %133 = vector.load %arg17[%c0_67, %c0_68] : memref<16x32xf32, #tpu.memory_space<vmem>>, vector<16x32xf32>
      tpu.vector_store %arg17[%c0_67, %c0_68], %132 {strides = array<i32>} : memref<16x32xf32, #tpu.memory_space<vmem>>, vector<16x32xf32>,
    } else {
    }
    %c0 = arith.constant 0 : index
    %c0_1 = arith.constant 0 : index
    %3 = vector.load %arg17[%c0, %c0_1] : memref<16x32xf32, #tpu.memory_space<vmem>>, vector<16x32xf32>
    %c0_2 = arith.constant 0 : index
    %c0_3 = arith.constant 0 : index
    %c0_4 = arith.constant 0 : index
    %4 = vector.load %arg3[%c0_2, %c0_3, %c0_4] : memref<1x1x32xf32, #tpu.memory_space<vmem>>, vector<1x1x32xf32>
    %5 = vector.shape_cast %4 : vector<1x1x32xf32> to vector<1x32xf32>
    %c0_5 = arith.constant 0 : index
    %c0_6 = arith.constant 0 : index
    %c0_7 = arith.constant 0 : index
    %6 = vector.load %arg4[%c0_5, %c0_6, %c0_7] : memref<1x1x32xf32, #tpu.memory_space<vmem>>, vector<1x1x32xf32>
    %7 = vector.shape_cast %6 : vector<1x1x32xf32> to vector<1x32xf32>
    %cst = arith.constant dense<0.000000e+00> : vector<16xf32>
    %8 = vector.multi_reduction <add>, %3, %cst [1] : vector<16x32xf32> to vector<16xf32>
    %9 = vector.shape_cast %8 : vector<16xf32> to vector<16x1xf32>
    %cst_8 = arith.constant 3.200000e+01 : f32
    %10 = vector.broadcast %cst_8 : f32 to vector<16x1xf32>
    %11 = arith.divf %9, %10 : vector<16x1xf32>
    %12 = vector.broadcast %11 : vector<16x1xf32> to vector<16x32xf32>
    %13 = arith.subf %3, %12 : vector<16x32xf32>
    %14 = arith.mulf %13, %13 : vector<16x32xf32>
    %cst_9 = arith.constant dense<0.000000e+00> : vector<16xf32>
    %15 = vector.multi_reduction <add>, %14, %cst_9 [1] : vector<16x32xf32> to vector<16xf32>
    %16 = vector.shape_cast %15 : vector<16xf32> to vector<16x1xf32>
    %cst_10 = arith.constant 3.200000e+01 : f32
    %17 = vector.broadcast %cst_10 : f32 to vector<16x1xf32>
    %18 = arith.divf %16, %17 : vector<16x1xf32>
    %19 = vector.broadcast %11 : vector<16x1xf32> to vector<16x32xf32>
    %20 = arith.subf %3, %19 : vector<16x32xf32>
    %cst_11 = arith.constant 9.99999974E-6 : f32
    %21 = vector.broadcast %cst_11 : f32 to vector<16x1xf32>
    %22 = arith.addf %18, %21 : vector<16x1xf32>
    %23 = math.rsqrt %22 : vector<16x1xf32>
    %24 = vector.broadcast %23 : vector<16x1xf32> to vector<16x32xf32>
    %25 = arith.mulf %20, %24 : vector<16x32xf32>
    %26 = vector.broadcast %5 : vector<1x32xf32> to vector<16x32xf32>
    %27 = arith.mulf %25, %26 : vector<16x32xf32>
    %28 = vector.broadcast %7 : vector<1x32xf32> to vector<16x32xf32>
    %29 = arith.addf %27, %28 : vector<16x32xf32>
    %30 = arith.truncf %29 : vector<16x32xf32> to vector<16x32xbf16>
    %c0_12 = arith.constant 0 : index
    %c0_13 = arith.constant 0 : index
    %c0_14 = arith.constant 0 : index
    %31 = vector.load %arg5[%c0_12, %c0_13, %c0_14] : memref<1x32x32xbf16, #tpu.memory_space<vmem>>, vector<1x32x32xbf16>
    %32 = vector.shape_cast %31 : vector<1x32x32xbf16> to vector<32x32xbf16>
    %cst_15 = arith.constant dense<0.000000e+00> : vector<16x32xf32>
    %33 = tpu.matmul %30, %32, %cst_15 {dimension_numbers = #tpu.dot_dimension_numbers<[1], [0], [0], [1], [0, 0, 1, 1], [], []>} : vector<16x32xbf16>, vector<32x32xbf16>, vector<16x32xf32> -> vector<16x32xf32>
    %c0_16 = arith.constant 0 : index
    %c0_17 = arith.constant 0 : index
    %c0_18 = arith.constant 0 : index
    %34 = vector.load %arg6[%c0_16, %c0_17, %c0_18] : memref<1x32x32xbf16, #tpu.memory_space<vmem>>, vector<1x32x32xbf16>
    %35 = vector.shape_cast %34 : vector<1x32x32xbf16> to vector<32x32xbf16>
    %cst_19 = arith.constant dense<0.000000e+00> : vector<16x32xf32>
    %36 = tpu.matmul %30, %35, %cst_19 {dimension_numbers = #tpu.dot_dimension_numbers<[1], [0], [0], [1], [0, 0, 1, 1], [], []>} : vector<16x32xbf16>, vector<32x32xbf16>, vector<16x32xf32> -> vector<16x32xf32>
    %c0_20 = arith.constant 0 : index
    %c0_21 = arith.constant 0 : index
    %c0_22 = arith.constant 0 : index
    %37 = vector.load %arg7[%c0_20, %c0_21, %c0_22] : memref<1x32x32xbf16, #tpu.memory_space<vmem>>, vector<1x32x32xbf16>
    %38 = vector.shape_cast %37 : vector<1x32x32xbf16> to vector<32x32xbf16>
    %cst_23 = arith.constant dense<0.000000e+00> : vector<16x32xf32>
    %39 = tpu.matmul %30, %38, %cst_23 {dimension_numbers = #tpu.dot_dimension_numbers<[1], [0], [0], [1], [0, 0, 1, 1], [], []>} : vector<16x32xbf16>, vector<32x32xbf16>, vector<16x32xf32> -> vector<16x32xf32>
    %40 = vector.shape_cast %33 : vector<16x32xf32> to vector<2x8x32xf32>
    %41 = tpu.transpose %40, [0, 2, 1] : vector<2x8x32xf32> -> vector<2x32x8xf32>
    %42 = vector.shape_cast %41 : vector<2x32x8xf32> to vector<8x8x8xf32>
    %43 = tpu.transpose %42, [0, 2, 1] : vector<8x8x8xf32> -> vector<8x8x8xf32>
    %44 = arith.truncf %43 : vector<8x8x8xf32> to vector<8x8x8xbf16>
    %45 = vector.shape_cast %36 : vector<16x32xf32> to vector<2x8x32xf32>
    %46 = tpu.transpose %45, [0, 2, 1] : vector<2x8x32xf32> -> vector<2x32x8xf32>
    %47 = vector.shape_cast %46 : vector<2x32x8xf32> to vector<8x8x8xf32>
    %48 = arith.truncf %47 : vector<8x8x8xf32> to vector<8x8x8xbf16>
    %49 = vector.shape_cast %39 : vector<16x32xf32> to vector<2x8x32xf32>
    %50 = tpu.transpose %49, [0, 2, 1] : vector<2x8x32xf32> -> vector<2x32x8xf32>
    %51 = vector.shape_cast %50 : vector<2x32x8xf32> to vector<8x8x8xf32>
    %52 = arith.truncf %51 : vector<8x8x8xf32> to vector<8x8x8xbf16>
    "tpu.trace_start"() <{level = 10 : i32, message = "bnd,bdm->bnm"}> : () -> ()
    %cst_24 = arith.constant dense<0.000000e+00> : vector<8x8x8xf32>
    %53 = tpu.matmul %44, %48, %cst_24 {dimension_numbers = #tpu.dot_dimension_numbers<[2], [1], [1], [2], [0, 0, 0, 1, 1, 2], [0], [0]>} : vector<8x8x8xbf16>, vector<8x8x8xbf16>, vector<8x8x8xf32> -> vector<8x8x8xf32>
    "tpu.trace_stop"() : () -> ()
    %cst_25 = arith.constant dense<0xFF800000> : vector<8x8xf32>
    %54 = vector.multi_reduction <maximumf>, %53, %cst_25 [2] : vector<8x8x8xf32> to vector<8x8xf32>
    %55 = vector.shape_cast %54 : vector<8x8xf32> to vector<8x8x1xf32>
    %56 = vector.broadcast %55 : vector<8x8x1xf32> to vector<8x8x8xf32>
    %57 = arith.subf %53, %56 : vector<8x8x8xf32>
    %58 = math.exp %57 : vector<8x8x8xf32>
    %cst_26 = arith.constant dense<0.000000e+00> : vector<8x8xf32>
    %59 = vector.multi_reduction <add>, %58, %cst_26 [2] : vector<8x8x8xf32> to vector<8x8xf32>
    %60 = vector.shape_cast %59 : vector<8x8xf32> to vector<8x8x1xf32>
    %61 = tpu.reciprocal %60 {approx = true} : vector<8x8x1xf32> -> vector<8x8x1xf32>
    %62 = vector.broadcast %61 : vector<8x8x1xf32> to vector<8x8x8xf32>
    %63 = arith.mulf %58, %62 : vector<8x8x8xf32>
    %64 = arith.truncf %63 : vector<8x8x8xf32> to vector<8x8x8xbf16>
    "tpu.trace_start"() <{level = 10 : i32, message = "bdm,bnm->bdn"}> : () -> ()
    %cst_27 = arith.constant dense<0.000000e+00> : vector<8x8x8xf32>
    %65 = tpu.matmul %52, %64, %cst_27 {dimension_numbers = #tpu.dot_dimension_numbers<[2], [2], [1], [1], [0, 0, 0, 1, 1, 1], [0], [0]>} : vector<8x8x8xbf16>, vector<8x8x8xbf16>, vector<8x8x8xf32> -> vector<8x8x8xf32>
    "tpu.trace_stop"() : () -> ()
    %66 = vector.shape_cast %65 : vector<8x8x8xf32> to vector<2x32x8xf32>
    %67 = tpu.transpose %66, [0, 2, 1] : vector<2x32x8xf32> -> vector<2x8x32xf32>
    %68 = vector.shape_cast %67 : vector<2x8x32xf32> to vector<16x32xf32>
    %69 = arith.truncf %68 : vector<16x32xf32> to vector<16x32xbf16>
    %c0_28 = arith.constant 0 : index
    %c0_29 = arith.constant 0 : index
    %c0_30 = arith.constant 0 : index
    %70 = vector.load %arg8[%c0_28, %c0_29, %c0_30] : memref<1x32x32xbf16, #tpu.memory_space<vmem>>, vector<1x32x32xbf16>
    %71 = vector.shape_cast %70 : vector<1x32x32xbf16> to vector<32x32xbf16>
    %cst_31 = arith.constant dense<0.000000e+00> : vector<16x32xf32>
    %72 = tpu.matmul %69, %71, %cst_31 {dimension_numbers = #tpu.dot_dimension_numbers<[1], [0], [0], [1], [0, 0, 1, 1], [], []>} : vector<16x32xbf16>, vector<32x32xbf16>, vector<16x32xf32> -> vector<16x32xf32>
    %c0_32 = arith.constant 0 : index
    %c0_33 = arith.constant 0 : index
    %c0_34 = arith.constant 0 : index
    %73 = vector.load %arg9[%c0_32, %c0_33, %c0_34] : memref<1x1x32xf32, #tpu.memory_space<vmem>>, vector<1x1x32xf32>
    %74 = vector.shape_cast %73 : vector<1x1x32xf32> to vector<1x32xf32>
    %75 = vector.broadcast %74 : vector<1x32xf32> to vector<16x32xf32>
    %76 = arith.addf %72, %75 : vector<16x32xf32>
    %77 = arith.addf %3, %76 : vector<16x32xf32>
    %c0_35 = arith.constant 0 : index
    %c0_36 = arith.constant 0 : index
    %c0_37 = arith.constant 0 : index
    %78 = vector.load %arg10[%c0_35, %c0_36, %c0_37] : memref<1x1x32xf32, #tpu.memory_space<vmem>>, vector<1x1x32xf32>
    %79 = vector.shape_cast %78 : vector<1x1x32xf32> to vector<1x32xf32>
    %c0_38 = arith.constant 0 : index
    %c0_39 = arith.constant 0 : index
    %c0_40 = arith.constant 0 : index
    %80 = vector.load %arg11[%c0_38, %c0_39, %c0_40] : memref<1x1x32xf32, #tpu.memory_space<vmem>>, vector<1x1x32xf32>
    %81 = vector.shape_cast %80 : vector<1x1x32xf32> to vector<1x32xf32>
    %cst_41 = arith.constant dense<0.000000e+00> : vector<16xf32>
    %82 = vector.multi_reduction <add>, %77, %cst_41 [1] : vector<16x32xf32> to vector<16xf32>
    %83 = vector.shape_cast %82 : vector<16xf32> to vector<16x1xf32>
    %cst_42 = arith.constant 3.200000e+01 : f32
    %84 = vector.broadcast %cst_42 : f32 to vector<16x1xf32>
    %85 = arith.divf %83, %84 : vector<16x1xf32>
    %86 = vector.broadcast %85 : vector<16x1xf32> to vector<16x32xf32>
    %87 = arith.subf %77, %86 : vector<16x32xf32>
    %88 = arith.mulf %87, %87 : vector<16x32xf32>
    %cst_43 = arith.constant dense<0.000000e+00> : vector<16xf32>
    %89 = vector.multi_reduction <add>, %88, %cst_43 [1] : vector<16x32xf32> to vector<16xf32>
    %90 = vector.shape_cast %89 : vector<16xf32> to vector<16x1xf32>
    %cst_44 = arith.constant 3.200000e+01 : f32
    %91 = vector.broadcast %cst_44 : f32 to vector<16x1xf32>
    %92 = arith.divf %90, %91 : vector<16x1xf32>
    %93 = vector.broadcast %85 : vector<16x1xf32> to vector<16x32xf32>
    %94 = arith.subf %77, %93 : vector<16x32xf32>
    %cst_45 = arith.constant 9.99999974E-6 : f32
    %95 = vector.broadcast %cst_45 : f32 to vector<16x1xf32>
    %96 = arith.addf %92, %95 : vector<16x1xf32>
    %97 = math.rsqrt %96 : vector<16x1xf32>
    %98 = vector.broadcast %97 : vector<16x1xf32> to vector<16x32xf32>
    %99 = arith.mulf %94, %98 : vector<16x32xf32>
    %100 = vector.broadcast %79 : vector<1x32xf32> to vector<16x32xf32>
    %101 = arith.mulf %99, %100 : vector<16x32xf32>
    %102 = vector.broadcast %81 : vector<1x32xf32> to vector<16x32xf32>
    %103 = arith.addf %101, %102 : vector<16x32xf32>
    %104 = arith.truncf %103 : vector<16x32xf32> to vector<16x32xbf16>
    %c0_46 = arith.constant 0 : index
    %c0_47 = arith.constant 0 : index
    %c0_48 = arith.constant 0 : index
    %105 = vector.load %arg12[%c0_46, %c0_47, %c0_48] : memref<1x32x64xbf16, #tpu.memory_space<vmem>>, vector<1x32x64xbf16>
    %106 = vector.shape_cast %105 : vector<1x32x64xbf16> to vector<32x64xbf16>
    %cst_49 = arith.constant dense<0.000000e+00> : vector<16x64xf32>
    %107 = tpu.matmul %104, %106, %cst_49 {dimension_numbers = #tpu.dot_dimension_numbers<[1], [0], [0], [1], [0, 0, 1, 1], [], []>} : vector<16x32xbf16>, vector<32x64xbf16>, vector<16x64xf32> -> vector<16x64xf32>
    %c0_50 = arith.constant 0 : index
    %c0_51 = arith.constant 0 : index
    %c0_52 = arith.constant 0 : index
    %108 = vector.load %arg13[%c0_50, %c0_51, %c0_52] : memref<1x1x64xf32, #tpu.memory_space<vmem>>, vector<1x1x64xf32>
    %109 = vector.shape_cast %108 : vector<1x1x64xf32> to vector<1x64xf32>
    %110 = vector.broadcast %109 : vector<1x64xf32> to vector<16x64xf32>
    %111 = arith.addf %107, %110 : vector<16x64xf32>
    %cst_53 = arith.constant 0.000000e+00 : f32
    %112 = vector.broadcast %cst_53 : f32 to vector<16x64xf32>
    %113 = arith.subf %112, %111 : vector<16x64xf32>
    %114 = math.exp %113 : vector<16x64xf32>
    %cst_54 = arith.constant 1.000000e+00 : f32
    %115 = vector.broadcast %cst_54 : f32 to vector<16x64xf32>
    %116 = arith.addf %115, %114 : vector<16x64xf32>
    %117 = tpu.reciprocal %116 {approx = true} : vector<16x64xf32> -> vector<16x64xf32>
    %118 = arith.mulf %111, %117 : vector<16x64xf32>
    %119 = arith.truncf %118 : vector<16x64xf32> to vector<16x64xbf16>
    %c0_55 = arith.constant 0 : index
    %c0_56 = arith.constant 0 : index
    %c0_57 = arith.constant 0 : index
    %120 = vector.load %arg14[%c0_55, %c0_56, %c0_57] : memref<1x64x32xbf16, #tpu.memory_space<vmem>>, vector<1x64x32xbf16>
    %121 = vector.shape_cast %120 : vector<1x64x32xbf16> to vector<64x32xbf16>
    %cst_58 = arith.constant dense<0.000000e+00> : vector<16x32xf32>
    %122 = tpu.matmul %119, %121, %cst_58 {dimension_numbers = #tpu.dot_dimension_numbers<[1], [0], [0], [1], [0, 0, 1, 1], [], []>} : vector<16x64xbf16>, vector<64x32xbf16>, vector<16x32xf32> -> vector<16x32xf32>
    %c0_59 = arith.constant 0 : index
    %c0_60 = arith.constant 0 : index
    %c0_61 = arith.constant 0 : index
    %123 = vector.load %arg15[%c0_59, %c0_60, %c0_61] : memref<1x1x32xf32, #tpu.memory_space<vmem>>, vector<1x1x32xf32>
    %124 = vector.shape_cast %123 : vector<1x1x32xf32> to vector<1x32xf32>
    %125 = vector.broadcast %124 : vector<1x32xf32> to vector<16x32xf32>
    %126 = arith.addf %122, %125 : vector<16x32xf32>
    %127 = arith.addf %77, %126 : vector<16x32xf32>
    %c0_62 = arith.constant 0 : index
    %c0_63 = arith.constant 0 : index
    %128 = vector.load %arg17[%c0_62, %c0_63] : memref<16x32xf32, #tpu.memory_space<vmem>>, vector<16x32xf32>
    tpu.vector_store %arg17[%c0_62, %c0_63], %127 {strides = array<i32>} : memref<16x32xf32, #tpu.memory_space<vmem>>, vector<16x32xf32>,
    %c1_i32 = arith.constant 1 : i32
    %129 = arith.cmpi eq, %arg1, %c1_i32 : i32
    %130 = arith.extui %129 : i1 to i32
    %c0_i32_64 = arith.constant 0 : i32
    %131 = arith.cmpi ne, %130, %c0_i32_64 : i32
    scf.if %131 {
      %c0_65 = arith.constant 0 : index
      %c0_66 = arith.constant 0 : index
      %132 = vector.load %arg16[%c0_65, %c0_66] : memref<16x32xf32, #tpu.memory_space<vmem>>, vector<16x32xf32>
      tpu.vector_store %arg16[%c0_65, %c0_66], %127 {strides = array<i32>} : memref<16x32xf32, #tpu.memory_space<vmem>>, vector<16x32xf32>,
    } else {
    }
    return
  }
  func.func @transform_0(%arg0: i32, %arg1: i32) -> (i32, i32) {
    %c0_i32 = arith.constant 0 : i32
    %c0_i32_0 = arith.constant 0 : i32
    return %arg0, %c0_i32 : i32, i32
  }
  func.func @transform_1(%arg0: i32, %arg1: i32) -> (i32, i32, i32) {
    %c0_i32 = arith.constant 0 : i32
    %c0_i32_0 = arith.constant 0 : i32
    %c0_i32_1 = arith.constant 0 : i32
    return %arg1, %c0_i32, %c0_i32_0 : i32, i32, i32
  }
  func.func @transform_2(%arg0: i32, %arg1: i32) -> (i32, i32, i32) {
    %c0_i32 = arith.constant 0 : i32
    %c0_i32_0 = arith.constant 0 : i32
    %c0_i32_1 = arith.constant 0 : i32
    return %arg1, %c0_i32, %c0_i32_0 : i32, i32, i32
  }
  func.func @transform_3(%arg0: i32, %arg1: i32) -> (i32, i32, i32) {
    %c0_i32 = arith.constant 0 : i32
    %c0_i32_0 = arith.constant 0 : i32
    %c0_i32_1 = arith.constant 0 : i32
    return %arg1, %c0_i32, %c0_i32_0 : i32, i32, i32
  }
  func.func @transform_4(%arg0: i32, %arg1: i32) -> (i32, i32, i32) {
    %c0_i32 = arith.constant 0 : i32
    %c0_i32_0 = arith.constant 0 : i32
    %c0_i32_1 = arith.constant 0 : i32
    return %arg1, %c0_i32, %c0_i32_0 : i32, i32, i32
  }
  func.func @transform_5(%arg0: i32, %arg1: i32) -> (i32, i32, i32) {
    %c0_i32 = arith.constant 0 : i32
    %c0_i32_0 = arith.constant 0 : i32
    %c0_i32_1 = arith.constant 0 : i32
    return %arg1, %c0_i32, %c0_i32_0 : i32, i32, i32
  }
  func.func @transform_6(%arg0: i32, %arg1: i32) -> (i32, i32, i32) {
    %c0_i32 = arith.constant 0 : i32
    %c0_i32_0 = arith.constant 0 : i32
    %c0_i32_1 = arith.constant 0 : i32
    return %arg1, %c0_i32, %c0_i32_0 : i32, i32, i32
  }
  func.func @transform_7(%arg0: i32, %arg1: i32) -> (i32, i32, i32) {
    %c0_i32 = arith.constant 0 : i32
    %c0_i32_0 = arith.constant 0 : i32
    %c0_i32_1 = arith.constant 0 : i32
    return %arg1, %c0_i32, %c0_i32_0 : i32, i32, i32
  }
  func.func @transform_8(%arg0: i32, %arg1: i32) -> (i32, i32, i32) {
    %c0_i32 = arith.constant 0 : i32
    %c0_i32_0 = arith.constant 0 : i32
    %c0_i32_1 = arith.constant 0 : i32
    return %arg1, %c0_i32, %c0_i32_0 : i32, i32, i32
  }
  func.func @transform_9(%arg0: i32, %arg1: i32) -> (i32, i32, i32) {
    %c0_i32 = arith.constant 0 : i32
    %c0_i32_0 = arith.constant 0 : i32
    %c0_i32_1 = arith.constant 0 : i32
    return %arg1, %c0_i32, %c0_i32_0 : i32, i32, i32
  }
  func.func @transform_10(%arg0: i32, %arg1: i32) -> (i32, i32, i32) {
    %c0_i32 = arith.constant 0 : i32
    %c0_i32_0 = arith.constant 0 : i32
    %c0_i32_1 = arith.constant 0 : i32
    return %arg1, %c0_i32, %c0_i32_0 : i32, i32, i32
  }
  func.func @transform_11(%arg0: i32, %arg1: i32) -> (i32, i32, i32) {
    %c0_i32 = arith.constant 0 : i32
    %c0_i32_0 = arith.constant 0 : i32
    %c0_i32_1 = arith.constant 0 : i32
    return %arg1, %c0_i32, %c0_i32_0 : i32, i32, i32
  }
  func.func @transform_12(%arg0: i32, %arg1: i32) -> (i32, i32, i32) {
    %c0_i32 = arith.constant 0 : i32
    %c0_i32_0 = arith.constant 0 : i32
    %c0_i32_1 = arith.constant 0 : i32
    return %arg1, %c0_i32, %c0_i32_0 : i32, i32, i32
  }
  func.func @transform_13(%arg0: i32, %arg1: i32) -> (i32, i32, i32) {
    %c0_i32 = arith.constant 0 : i32
    %c0_i32_0 = arith.constant 0 : i32
    %c0_i32_1 = arith.constant 0 : i32
    return %arg1, %c0_i32, %c0_i32_0 : i32, i32, i32
  }
  func.func @transform_14(%arg0: i32, %arg1: i32) -> (i32, i32) {
    %c0_i32 = arith.constant 0 : i32
    %c0_i32_0 = arith.constant 0 : i32
    return %arg0, %c0_i32 : i32, i32
  }
}

</mosaic_0001>

<bundles_post_ra>
// kernel: tpu_custom_call.1
= control target key start
LH: loop header
LB: loop body
LE: loop exit
PB: predicated region body
PF: predicated region fallthrough
CT: control target
= control target key end

     0   :  { %s4313_s0 = inlined_call_operand.vmem [shape: f32[32,32], index: 0, kind: input, shape index: {}]   ;;  %s4314_s1 = inlined_call_operand.hbm [shape: f32[2,1,32], index: 1, kind: input, shape index: {}]   ;;  %s4315_s2 = inlined_call_operand.vmem [shape: f32[2,1,32], index: 2, kind: input, shape index: {}]   ;;  %s4316_s3 = inlined_call_operand.vmem [shape: bf16[2,32,32], index: 3, kind: input, shape index: {}]   ;;  %s4317_s4 = inlined_call_operand.vmem [shape: bf16[2,32,32], index: 4, kind: input, shape index: {}]   ;;  %s4318_s5 = inlined_call_operand.hbm [shape: bf16[2,32,32], index: 5, kind: input, shape index: {}]   ;;  %s4319_s6 = inlined_call_operand.hbm [shape: bf16[2,32,32], index: 6, kind: input, shape index: {}]   ;;  %s4320_s7 = inlined_call_operand.vmem [shape: f32[2,1,32], index: 7, kind: input, shape index: {}]   ;;  %s4321_s8 = inlined_call_operand.vmem [shape: f32[2,1,32], index: 8, kind: input, shape index: {}]   ;;  %s4322_s9 = inlined_call_operand.vmem [shape: f32[2,1,32], index: 9, kind: input, shape index: {}]   ;;  %s4323_s10 = inlined_call_operand.hbm [shape: bf16[2,32,64], index: 10, kind: input, shape index: {}]   ;;  %s4324_s11 = inlined_call_operand.vmem [shape: f32[2,1,64], index: 11, kind: input, shape index: {}]   ;;  %s4325_s12 = inlined_call_operand.vmem [shape: bf16[2,64,32], index: 12, kind: input, shape index: {}]   ;;  %s4326_s13 = inlined_call_operand.vmem [shape: f32[2,1,32], index: 13, kind: input, shape index: {}]   ;;  %s4327_s14 = inlined_call_operand.hbm [shape: f32[32,32], index: 14, kind: output, shape index: {}]  }
   0x1   :  { %4348 = sst [smem:[#allocation30_spill]] %s4313_s0 }
   0x2   :  { %4349 = sst [smem:[#allocation31_spill]] %s4314_s1 }
   0x3   :  { %4350 = sst [smem:[#allocation32_spill]] %s4316_s3 }
   0x4   :  { %4351 = sst [smem:[#allocation33_spill]] %s4317_s4 }
   0x5   :  { %4352 = sst [smem:[#allocation34_spill]] %s4318_s5 }
   0x6   :  { %4353 = sst [smem:[#allocation35_spill]] %s4319_s6 }
   0x7   :  { %4354 = sst [smem:[#allocation36_spill]] %s4320_s7 }
   0x8   :  { %4355 = sst [smem:[#allocation37_spill]] %s4321_s8 }
   0x9   :  { %4356 = sst [smem:[#allocation38_spill]] %s4322_s9 }
   0xa   :  { %4357 = sst [smem:[#allocation39_spill]] %s4323_s10 }
   0xb   :  { %4358 = sst [smem:[#allocation40_spill]] %s4324_s11 }
   0xc   :  { %4359 = sst [smem:[#allocation41_spill]] %s4325_s12 }
   0xd   :  { %4360 = sst [smem:[#allocation42_spill]] %s4326_s13 }
   0xe   :  { %4361 = sst [smem:[#allocation43_spill]] %s4327_s14 }
   0xf   :  { %19 = vsyncpa [#allocation4], 0 }
  0x10   :  { %21 = vsyncpa [#allocation4 + $0x1], 0 }
  0x11   :  { %22 = vsyncpa [#allocation7], 0 }
  0x12   :  { %24 = vsyncpa [#allocation7 + $0x1], 0 }
  0x13   :  { %25 = vsyncpa [#allocation10], 0 }
  0x14   :  { %27 = vsyncpa [#allocation10 + $0x1], 0 }
  0x15   :  { %28 = vsyncpa [#allocation5], 0 }
  0x16   :  { %30 = vsyncpa [#allocation5 + $0x1], 0  ;;  %s3748_s29 = smov 0   ;;  %s3750_s30 = smov 0  }
  0x17   :  { %s3752_s15 = smov 0   ;;  %s3754_s16 = smov 0  }
  0x18   :  { %s3756_s17 = smov 0   ;;  %s3758_s18 = smov 0  }
  0x19   :  { %s3760_s19 = smov 0   ;;  %s3762_s20 = smov 0  }
  0x1a   :  { %s3764_s21 = smov 0   ;;  %s3766_s22 = smov 0  }
  0x1b   :  { %s3768_s23 = smov 0  }
  0x1c LB: > { %4362 = sst [smem:[#allocation16_spill]] %s3620_s29  ;;  %s3802_s24 = sadd.s32 4294967295, %s3660_s23   ;;  %s3660_s23 = sphi %s3768_s23, %s36_s23   ;;  %s3656_s22 = sphi %s3766_s22, %s4427_s22   ;;  %s3652_s21 = sphi %s3764_s21, %s4426_s21   ;;  %s3648_s20 = sphi %s3762_s20, %s4425_s20   ;;  %s3644_s19 = sphi %s3760_s19, %s4424_s19   ;;  %s3640_s18 = sphi %s3758_s18, %s4423_s18   ;;  %s3636_s17 = sphi %s3756_s17, %s4422_s17   ;;  %s3632_s16 = sphi %s3754_s16, %s4421_s16   ;;  %s3628_s15 = sphi %s3752_s15, %s4420_s15   ;;  %s3624_s30 = sphi %s3750_s30, %s4419_s30   ;;  %s3620_s29 = sphi %s3748_s29, %s4418_s29  }
  0x1d   : > { %4363 = sst [smem:[#allocation17_spill]] %s3624_s30  ;;  %s2932_s25 = sadd.s32 4294967294, %s3660_s23  }
  0x1e   : > { %4364 = sst [smem:[#allocation18_spill]] %s3628_s15  ;;  %s45_s26 = sadd.s32 1, %s3652_s21 }
  0x1f   : > { %4365 = sst [smem:[#allocation19_spill]] %s3636_s17  ;;  %s48_s27 = sadd.s32 1, %s3656_s22 }
  0x20   : > { %4366 = sst [smem:[#allocation20_spill]] %s3640_s18  ;;  %p46_p0 = scmp.ge.s32.totalorder %s45_s26, 2 }
  0x21   : > { %4367 = sst [smem:[#allocation21_spill]] %s3652_s21  ;;  %s81_s28 = sadd.s32 1, %s3640_s18 }
  0x22   : > { %4368 = sst [smem:[#allocation22_spill]] %s3656_s22  ;;  %p88_p1 = scmp.ne.s32.totalorder %s3640_s18, %s3636_s17 }
  0x23   : > { %4369 = sst [smem:[#allocation23_spill]] %s3660_s23  ;;  %p89_p2 = scmp.eq.s32.totalorder %s3660_s23, 0 }
  0x24   : > { %s4429_s26 = smov (%p46_p0, %s45_s26), 0  ;;  %s4431_s27 = smov (!%p46_p0, %s48_s27), %s3656_s22 }
  0x25   : > { %4370 = sst [smem:[#allocation24_spill]] %s4429_s26  ;;  %s78_s14 = ssub.s32 %s3652_s21, %s4429_s26 }
  0x26   : > { %p3816_p3 = por %p89_p2, %p88_p1  ;;  %p50_p4 = scmp.ge.s32.totalorder %s4431_s27, 2 }
  0x27   : > { %p79_p5 = scmp.eq.s32.totalorder %s78_s14, 0  ;;  %p94_p6 = scmp.ne.s32.totalorder %s3636_s17, %s3632_s16 }
  0x28   : > { %p95_p7 = scmp.eq.s32.totalorder %s3802_s24, 0  ;;  %s4433_s27 = smov (%p50_p4, %s4431_s27), 0 }
  0x29   : > { %4372 = sst [smem:[#allocation25_spill]] %s4433_s27  ;;  %s416_s11 = ssub.s32 %s3656_s22, %s4433_s27 }
  0x2a   : > { %s3825_s12 = scalar_select %p79_p5, %s3640_s18, %s81_s28  }
  0x2b   : > { %p3827_p8 = por %p95_p7, %p94_p6  ;;  %p417_p9 = scmp.eq.s32.totalorder %s416_s11, 0 }
  0x2c   : > { %4373 = sst [smem:[#allocation26_spill]] %s3825_s12  ;;  %s419_s9 = sadd.s32 1, %s3628_s15 }
  0x2d   : > { %p429_p10 = scmp.ne.s32.totalorder %s3628_s15, %s3624_s30  ;;  %p430_p11 = scmp.eq.s32.totalorder %s3802_s24, 3 }
  0x2e   : > { %s3838_s14 = scalar_select %p417_p9, %s3628_s15, %s419_s9  }
  0x2f   : > { %p3840_p12 = por %p430_p11, %p429_p10  ;;  %p435_p13 = scmp.ne.s32.totalorder %s3624_s30, %s3620_s29 }
  0x30   : > { %4375 = sst [smem:[#allocation27_spill]] %s3838_s14  ;;  %p436_p0 = scmp.eq.s32.totalorder %s2932_s25, 3 }
  0x31   : > { %s4376_s16 = scalar_select %p3840_p12, 1, 0 }
  0x32   : > { %p3242_p1 = scmp.lt.s32.totalorder %s3660_s23, 4  ;;  %s3848_s28 = sand.u32 1, %s3640_s18  }
  0x33   : > { %4377 = sst [smem:[#allocation28_spill]] %s4376_s16  ;;  %p3850_p2 = por %p436_p0, %p435_p13 }
  0x34   : > { %s504_s11 = sand.u32 1, %s3660_s23   ;;  %p3857_p4 = pnand %p3242_p1, %p3816_p3 }
  0x35   : > { %s4378_s12 = scalar_select %p3850_p2, 1, 0 }
  0x36   : > { %s3862_s9 = sshll.u32 %s3848_s28, 4  ;;  %s3865_s25 = sshll.u32 %s3652_s21, 8 }
  0x37   : > { %4379 = sst [smem:[#allocation29_spill]] %s4378_s12  ;;  %s508_s15 = scalar_lea.vmem [#allocation6], %s3862_s9 }
  0x38   : > { %s4381_s5 = sld [smem:[#allocation34_spill]]  ;;  %s515_s12 = sshll.u32 %s508_s15, 4  ;;  %s516_s12 = int_to_ptr.vmem [resolvable:$true] %s515_s12 }
  0x39   : > { %p2945_p5 = scmp.ge.s32.totalorder %s3660_s23, 1  ;;  %s3873_s13 = scalar_lea.sflag [#allocation7], %s504_s11 }
  0x3a   : > { %p3422_p3 = pneg %p3857_p4  ;;  %s3433_s29 = scalar_lea.vmem %s516_s12, 256 }
  0x3b   : > { %p3434_p6 = scmp.ne.s32.totalorder %s516_s12, %s3433_s29  ;;  %s3662_s16 = smov [#allocation6]  }
  0x3c   : > { %s3438_s8 = sshll.u32 %s3662_s16, 4  ;;  %s3439_s8 = int_to_ptr.vmem [resolvable:$false] %s3438_s8 }
  0x3d   : > { %p3436_p7 = pnand %p3434_p6, %p3422_p3  ;;  %s3440_s4 = scalar_lea.vmem %s3439_s8, 512 }
  0x3e   : > { %s514_s14 = scalar_lea.hbm %s4381_s5, %s3865_s25  ;;  %p3441_p10 = scmp.lt.s32.totalorder %s516_s12, %s3439_s8 }
  0x3f   : > { %p3437_p9 = pneg %p3436_p7  ;;  %p3442_p11 = scmp.lt.s32.totalorder %s3440_s4, %s3433_s29 }
  0x41   : > { %p3443_p13 = por %p3442_p11, %p3441_p10 }
  0x43   : > { %p3444_p0 = pnand %p3443_p13, %p3437_p9 }
  0x45   : > { %3447 = shalt.err (!%p3444_p0)
}
  0x46   : > { %s4338_s15 = smov 64   ;;  %s4340_s18 = smov 4  }
  0x47   : > { %3231 = dma.hbm_to_vmem [thread:$0]  (!%p3857_p4), %s514_s14, 256, %s516_s12, %s3873_s13, %s4338_s15, %s4338_s15, %s4340_s18  }
  0x48   : > { %p603_p1 = scmp.lt.s32.totalorder %s3660_s23, 5  ;;  %s2935_s8 = sshll.u32 %s3652_s21, 4 }
  0x49   : > { %s468_s29 = scalar_lea.vmem [#allocation3], %s3848_s28  ;;  %s4383_s1 = sld [smem:[#allocation31_spill]] }
  0x4a   : > { %p3889_p6 = pnand %p2945_p5, %p603_p1  ;;  %s475_s22 = sshll.u32 %s468_s29, 4  ;;  %s476_s22 = int_to_ptr.vmem [resolvable:$true] %s475_s22 }
  0x4b   : > { %s466_s3 = scalar_lea.sflag [#allocation4], %s3848_s28  ;;  %s3461_s7 = scalar_lea.vmem %s476_s22, 16 }
  0x4c   : > { %p3462_p7 = scmp.ne.s32.totalorder %s476_s22, %s3461_s7  ;;  %s3665_s12 = smov [#allocation3]  }
  0x4d   : > { %s3466_s14 = sshll.u32 %s3665_s12, 4  ;;  %s3467_s14 = int_to_ptr.vmem [resolvable:$false] %s3466_s14 }
  0x4e   : > { %p3464_p9 = pnand %p3462_p7, %p3422_p3  ;;  %s3468_s15 = scalar_lea.vmem %s3467_s14, 32 }
  0x4f   : > { %s473_s5 = scalar_lea.hbm %s4383_s1, %s2935_s8  ;;  %p3469_p5 = scmp.lt.s32.totalorder %s476_s22, %s3467_s14 }
  0x50   : > { %p3465_p10 = pneg %p3464_p9  ;;  %p3470_p11 = scmp.lt.s32.totalorder %s3468_s15, %s3461_s7 }
  0x52   : > { %p3471_p13 = por %p3470_p11, %p3469_p5 }
  0x54   : > { %p3472_p0 = pnand %p3471_p13, %p3465_p10 }
  0x56   : > { %3475 = shalt.err (!%p3472_p0)
}
  0x57   : > { %3228 = dma.hbm_to_vmem [thread:$0]  (!%p3857_p4), %s473_s5, 16, %s476_s22, %s466_s3  }
  0x58   : > { %s4384_s6 = sld [smem:[#allocation35_spill]]  ;;  %s529_s11 = scalar_lea.vmem [#allocation8], %s3862_s9 }
  0x59   : > { %s536_s18 = sshll.u32 %s529_s11, 4  ;;  %s3666_s7 = smov [#allocation8]   ;;  %s537_s18 = int_to_ptr.vmem [resolvable:$true] %s536_s18 }
  0x5a   : > { %s3489_s12 = scalar_lea.vmem %s537_s18, 256  ;;  %s3494_s15 = sshll.u32 %s3666_s7, 4  ;;  %s3495_s15 = int_to_ptr.vmem [resolvable:$false] %s3494_s15 }
  0x5b   : > { %p3490_p1 = scmp.ne.s32.totalorder %s537_s18, %s3489_s12  ;;  %s3496_s14 = scalar_lea.vmem %s3495_s15, 512 }
  0x5c   : > { %p3497_p10 = scmp.lt.s32.totalorder %s537_s18, %s3495_s15  ;;  %p3498_p5 = scmp.lt.s32.totalorder %s3496_s14, %s3489_s12 }
  0x5d   : > { %p3492_p7 = pnand %p3490_p1, %p3422_p3 }
  0x5e   : > { %s535_s16 = scalar_lea.hbm %s4384_s6, %s3865_s25  ;;  %p3499_p11 = por %p3498_p5, %p3497_p10 }
  0x5f   : > { %p3493_p9 = pneg %p3492_p7 }
  0x61   : > { %p3500_p13 = pnand %p3499_p11, %p3493_p9 }
  0x63   : > { %3503 = shalt.err (!%p3500_p13)
}
  0x64   : > { %s4385_s3 = smov 4   ;;  %s4386_s5 = smov 64  }
  0x65   : > { %3234 = dma.hbm_to_vmem [thread:$0]  (!%p3857_p4), %s535_s16, 256, %s537_s18, %s3873_s13, %s4386_s5, %s4386_s5, %s4385_s3  }
  0x66   : > { %s4387_s10 = sld [smem:[#allocation39_spill]]  ;;  %s568_s11 = scalar_lea.vmem [#allocation9], %s3862_s9 }
  0x67   : > { %s575_s12 = sshll.u32 %s568_s11, 4  ;;  %s565_s7 = scalar_lea.sflag [#allocation10], %s3848_s28  ;;  %s576_s12 = int_to_ptr.vmem [resolvable:$true] %s575_s12 }
  0x68   : > { %s3517_s15 = scalar_lea.vmem %s576_s12, 256  ;;  %s3667_s14 = smov [#allocation9]  }
  0x69   : > { %p3518_p0 = scmp.ne.s32.totalorder %s576_s12, %s3517_s15  ;;  %s3522_s1 = sshll.u32 %s3667_s14, 4  ;;  %s3523_s1 = int_to_ptr.vmem [resolvable:$false] %s3522_s1 }
  0x6a   : > { %s3524_s6 = scalar_lea.vmem %s3523_s1, 512  ;;  %p3525_p9 = scmp.lt.s32.totalorder %s576_s12, %s3523_s1 }
  0x6b   : > { %p3520_p1 = pnand %p3518_p0, %p3422_p3  ;;  %p3526_p10 = scmp.lt.s32.totalorder %s3524_s6, %s3517_s15 }
  0x6c   : > { %s574_s29 = scalar_lea.hbm %s4387_s10, %s3865_s25 }
  0x6d   : > { %p3521_p7 = pneg %p3520_p1  ;;  %p3527_p5 = por %p3526_p10, %p3525_p9 }
  0x6f   : > { %p3528_p11 = pnand %p3527_p5, %p3521_p7 }
  0x71   : > { %3531 = shalt.err (!%p3528_p11)
}
  0x72   : > { %3237 = dma.hbm_to_vmem [thread:$0]  (!%p3857_p4), %s574_s29, 256, %s576_s12, %s565_s7, %s4386_s5, %s4386_s5, %s4385_s3  }
  0x73   : > { %607 = sbr.rel (%p3889_p6) target bundleno = 2789 (0xae5), region = 76  ;;  %s3935_s28 = sand.u32 (!%p3889_p6), 1, %s3636_s17  }
  0x74   : > { %s610_s1 = scalar_lea.sflag (!%p3889_p6), [#allocation4], %s3935_s28 }
  0x78   : > { %3603 = dma.done.wait (%p3827_p8), %s610_s1, 16  }
  0x79   : > { %3605 = vsyncadd (%p3827_p8), %s610_s1, 4294967280  ;;  %s617_s27 = sand.u32 1, %s3802_s24   ;;  %s3945_s9 = sshll.u32 %s3935_s28, 4 }
  0x7a   : > { %s618_s25 = scalar_lea.sflag [#allocation7], %s617_s27 }
  0x7b   : > { %3607 = dma.done.wait (%p3827_p8), %s618_s25, 512  }
  0x7c   : > { %3609 = vsyncadd (%p3827_p8), %s618_s25, 4294966784  ;;  %s636_s4 = scalar_lea.sflag [#allocation10], %s3935_s28 }
  0x7d   : > { %3611 = dma.done.wait (%p3827_p8), %s636_s4, 256  }
  0x7e   : > { %3613 = vsyncadd (%p3827_p8), %s636_s4, 4294967040  ;;  %s4342_s24 = sand.u32 1, %s3624_s30   ;;  %s2950_s3 = sshll.u32 %s3648_s20, 1 }
  0x7f   : > { %s2949_s5 = sshll.u32 %s4342_s24, 4  ;;  %p737_p4 = scmp.lt.s32.totalorder %s2950_s3, 3 }
  0x80   : > { %p742_p3 = scmp.lt.s32.totalorder %s3644_s19, 1  ;;  %s4388_s0 = sld [smem:[#allocation30_spill]] }
  0x81   : > { %s4435_s3 = smov (!%p737_p4, %s2950_s3), 3  ;;  %s4390_s18 = sld [smem:[#allocation32_spill]] }
  0x82   : > { %s3965_s22 = scalar_select %p742_p3, %s3644_s19, 1 }
  0x83   : > { %s2951_s26 = sshll.u32 %s4435_s3, 3  ;;  %s4391_s10 = sld [smem:[#allocation33_spill]] }
  0x84   : > { %s3011_s14 = sshll.u32 %s3965_s22, 4  ;;  %s4392_s29 = sld [smem:[#allocation37_spill]] }
  0x85   : > { %s4394_s25 = sld [smem:[#allocation40_spill]]  ;;  %s3013_s16 = sshll.u32 %s3965_s22, 5 }
  0x86   : > { %s740_s11 = scalar_lea.vmem %s4388_s0, %s2951_s26  ;;  %s4393_s0 = sld [smem:[#allocation38_spill]] }
  0x87   : > { %s3982_s13 = scalar_lea.vmem %s4390_s18, %s3011_s14  ;;  %s4395_s23 = sld [smem:[#allocation41_spill]] }
  0x88   : > { %s4011_s26 = scalar_lea.vmem [#allocation11], %s2949_s5  ;;  %p2958_p8 = scmp.ne.s32.totalorder %s3644_s19, 0 }
  0x89   : > { %s3987_s21 = scalar_lea.vmem %s4391_s10, %s3011_s14  ;;  %s4396_s14 = sld [smem:[#allocation42_spill]] }
  0x8a   : > { %s760_s12 = scalar_lea.vmem %s4392_s29, %s3965_s22 }
  0x8b   : > { %s766_s4 = scalar_lea.vmem %s4394_s25, %s3965_s22  ;;  %780 = sbr.rel (%p2958_p8) target bundleno = 146 (0x92), region = 96 }
  0x8c   : > { %s763_s17 = scalar_lea.vmem %s4393_s0, %s3965_s22 }
  0x8d   : > { %s4005_s30 = scalar_lea.vmem %s4395_s23, %s3013_s16 }
  0x8f   : > { %s774_s3 = scalar_lea.vmem %s4396_s14, %s3965_s22 }
  0x90   : > { %v781_v0 = vld [vmem:[%s740_s11] sm:$0xff]  ;;  %vm783_vm0 = vcmask 261120   ;;  %v782_v1 = vld [vmem:[%s740_s11 + $0x8] sm:$0xff] }
  0x91   : > { %784 = vst.msk [vmem:[#allocation2] sm:$0xff] %vm783_vm0, %v781_v0  ;;  %785 = vst.msk [vmem:[#allocation2 + $0x8] sm:$0xff] %vm783_vm0, %v782_v1 }
  0x92 PF: > { %vm790_vm1 = vcmask 261120   ;;  %v3358_v16 = vld [vmem:[%s3982_s13 + $0x8] sm:$0xff]   ;;  %v3668_v18 = vmov 0.0   ;;  %v3360_v19 = vld [vmem:[%s3982_s13] sm:$0xff]   ;;  %vm3669_vm2 = vmmov 0   ;;  %s4397_s0 = scalar_lea.vmem [#allocation3], %s3935_s28  ;;  %s4398_s13 = scalar_lea.vmem %s4315_s2, %s3965_s22 }
  0x93   : > { %v3359_v17 = vld [vmem:[%s3987_s21 + $0x8] sm:$0xff]   ;;  %3067 = vmatprep.subr.bf16.mxu0 %v3668_v18  ;;  %3075 = vmatprep.subr.bf16.mxu1 %v3668_v18  ;;  %v3361_v20 = vld [vmem:[%s3987_s21] sm:$0xff]   ;;  %s4399_s5 = scalar_lea.vmem [#allocation6], %s3945_s9  ;;  %vm1485_vm3 = vcmask 1043456   ;;  %vm1481_vm4 = vcmask 64512   ;;  %s4401_s11 = scalar_lea.vmem [#allocation8], %s3945_s9 }
  0x94   : > { %3068 = vmatpush3.bf16.msra.mxu0 %v3358_v16  ;;  %3076 = vmatpush3.bf16.msra.mxu1 %v3359_v17  ;;  %v2959_v29 = vld [vmem:[%s4397_s0] ss:$0 sm:$0xff]  ;;  %s4400_s28 = smov %s4399_s5  ;;  %s4402_s15 = smov %s4401_s11  ;;  %vm2613_vm5 = vcmask 523264  }
  0x95   : > { %3069 = vmatprep.subr.bf16.mxu0 %v3668_v18  ;;  %3077 = vmatprep.subr.bf16.mxu1 %v3668_v18  ;;  %v2960_v33 = vld [vmem:[%s4398_s13] ss:$0 sm:$0xff]  ;;  %s4403_s7 = sld [smem:[#allocation36_spill]]  ;;  %s4405_s27 = scalar_lea.vmem [#allocation9], %s3945_s9 }
  0x96   : > { %3071 = vmatprep.mubr.msk.bf16.mxu0 %vm3669_vm2, %v3668_v18  ;;  %3079 = vmatprep.mubr.msk.bf16.mxu1 %vm3669_vm2, %v3668_v18  ;;  %v3362_v37 = vld [vmem:[%s4399_s5 + $0x8] sm:$0xff]   ;;  %s4406_s25 = smov %s4405_s27  ;;  %p3002_p6 = scmp.ne.s32.totalorder %s3644_s19, 1 }
  0x97   : > { %v3363_v39 = vld [vmem:[%s4400_s28] sm:$0xff]  }
  0x98   : > { %v4014_v2 = vld [vmem:[#allocation2] sm:$0xff]  ;;  %v4016_v3 = vld [vmem:[#allocation2 + $0x8] sm:$0xff]  ;;  %3070 = vmatpush3.bf16.msra.mxu0 %v3360_v19  ;;  %3078 = vmatpush3.bf16.msra.mxu1 %v3361_v20 }
  0x99   : > { %v791_v4 = vsel %vm790_vm1, %v4014_v2, 0.0  ;;  %v794_v5 = vsel %vm790_vm1, %v4016_v3, 0.0  ;;  %3083 = vmatprep.subr.bf16.mxu0 %v3668_v18  ;;  %3091 = vmatprep.subr.bf16.mxu1 %v3668_v18 }
  0x9a   : > { %792 = vadd.xlane.f32.xlu0 %v791_v4 }
  0x9b   : > { %s4404_s1 = scalar_lea.vmem %s4403_s7, %s3965_s22 }
  0x9e   : > { %795 = vadd.xlane.f32.xlu0 %v794_v5 }
 0x123   : > { %v793_v6 = vpop.xlane.xlu0 %792 }
 0x124   : > { %v798_v7 = vmul.f32 0.03125, %v793_v6 }
 0x126   : > { %v800_v8 = vsub.f32 %v4014_v2, %v798_v7 }
 0x127   : > { %v796_v9 = vpop.xlane.xlu0 %795 }
 0x128   : > { %v799_v10 = vmul.f32 0.03125, %v796_v9  ;;  %v802_v11 = vmul.f32 %v800_v8, %v800_v8 }
 0x12a   : > { %v801_v12 = vsub.f32 %v4016_v3, %v799_v10  ;;  %v804_v13 = vsel %vm790_vm1, %v802_v11, 0.0 }
 0x12b   : > { %805 = vadd.xlane.f32.xlu1 %v804_v13 }
 0x12c   : > { %v803_v14 = vmul.f32 %v801_v12, %v801_v12 }
 0x12e   : > { %v807_v15 = vsel %vm790_vm1, %v803_v14, 0.0 }
 0x12f   : > { %808 = vadd.xlane.f32.xlu1 %v807_v15 }
 0x1b4   : > { %v806_v21 = vpop.xlane.xlu1 %805 }
 0x1b5   : > { %v810_v22 = vmul.f32 0.03125, %v806_v21 }
 0x1b7   : > { %v812_v23 = vadd.f32 1e-05, %v810_v22 }
 0x1b8   : > { %v809_v24 = vpop.xlane.xlu1 %808 }
 0x1b9   : > { %3372 = vrsqrt.f32 %v812_v23  ;;  %v811_v25 = vmul.f32 0.03125, %v809_v24 }
 0x1bb   : > { %v813_v26 = vadd.f32 1e-05, %v811_v25 }
 0x1bd   : > { %3374 = vrsqrt.f32 %v813_v26 }
 0x1c6   : > { %v3373_v27 = vpop.eup %3372 }
 0x1c7   : > { %v816_v28 = vmul.f32 %v3373_v27, %v800_v8 }
 0x1c9   : > { %v824_v32 = vmul.f32 %v2959_v29, %v816_v28 }
 0x1ca   : > { %v3375_v30 = vpop.eup %3374 }
 0x1cb   : > { %v817_v31 = vmul.f32 %v3375_v30, %v801_v12  ;;  %v832_v35 = vadd.f32 %v2960_v33, %v824_v32 }
 0x1cd   : > { %v825_v34 = vmul.f32 %v2959_v29, %v817_v31 }
 0x1cf   : > { %v833_v36 = vadd.f32 %v2960_v33, %v825_v34 }
 0x1d1   : > { %v834_v38 = vpack.c.bf16 %v833_v36, %v832_v35 }
 0x1d3   : > { %3072 = vmatmul.mubr.msk.bf16.vlgmr.msra.gmra.mxu0 %vm790_vm1, %v834_v38  ;;  %3080 = vmatmul.mubr.msk.bf16.vlgmr.msra.gmra.mxu1 %vm790_vm1, %v834_v38 }
 0x1d4   : > { %3084 = vmatpush3.bf16.msra.mxu0 %v3362_v37  ;;  %3087 = vmatprep.mubr.msk.bf16.mxu0 %vm3669_vm2, %v3668_v18 }
 0x1d5   : > { %3085 = vmatprep.subr.bf16.mxu0 %v3668_v18  ;;  %3093 = vmatprep.mubr.msk.bf16.mxu1 %vm3669_vm2, %v3668_v18 }
 0x1d8   : > { %3086 = vmatpush3.bf16.msra.mxu0 %v3363_v39 }
 0x1d9   : > { %3097 = vmatprep.subr.bf16.mxu0 %v3668_v18 }
 0x1db   : > { %3088 = vmatmul.mubr.msk.bf16.vlgmr.msra.gmra.mxu0 %vm790_vm1, %v834_v38 }
 0x1dc   : > { %3099 = vmatprep.mubr.msk.bf16.mxu0 %vm3669_vm2, %v3668_v18 }
 0x293   : > { %v888_v40 = vpop.f32.mrf.mxu0  ;;  %v945_v41 = vpop.f32.mrf.mxu1 }
 0x294   : > { %1009 = vxpose.xlu0.b32.start.end [1/1] (short) (narrow) %v888_v40, 32 }
 0x295   : > { %v3073_v42 = vpop.f32.mrf.mxu0  ;;  %v3081_v43 = vpop.f32.mrf.mxu1 }
 0x297   : > { %v891_v44 = vpop.f32.mrf.mxu0  ;;  %v948_v45 = vpop.f32.mrf.mxu1 }
 0x298   : > { %1041 = vxpose.xlu1.b32.start.end [1/1] (short) (narrow) %v891_v44, 32 }
 0x299   : > { %v3074_v46 = vpop.f32.mrf.mxu0  ;;  %v3082_v47 = vpop.f32.mrf.mxu1 }
 0x29b   : > { %v4062_v48 = vpop.f32.mrf.mxu0 }
 0x29d   : > { %v3089_v49 = vpop.f32.mrf.mxu0 }
 0x29f   : > { %v4064_v50 = vpop.f32.mrf.mxu0 }
 0x2a1   : > { %1337 = vxpose.xlu0.b32.start.end [1/1] (short) (narrow) %v945_v41, 32  ;;  %v3090_v51 = vpop.f32.mrf.mxu0 }
 0x310   : > { %v1025_v52 = vpop.trf.xlu0 }
 0x311   : > { %1073 = vxpose.xlu1.b32.start.end [1/1] (short) (narrow) %v1025_v52, 8 }
 0x314   : > { %v1026_v53 = vpop.trf.xlu0  ;;  %v1057_v54 = vpop.trf.xlu1 }
 0x315   : > { %1105 = vxpose.xlu0.b32.start.end [1/1] (short) (narrow) %v1026_v53, 8 }
 0x318   : > { %v1027_v55 = vpop.trf.xlu0  ;;  %v1058_v56 = vpop.trf.xlu1 }
 0x319   : > { %1201 = vxpose.xlu0.b32.start.end [1/1] (short) (narrow) %v1057_v54, 8 }
 0x31c   : > { %v1028_v57 = vpop.trf.xlu0  ;;  %v1059_v58 = vpop.trf.xlu1 }
 0x31d   : > { %v3338_v59 = vpack.i.bf16 %v1028_v57, %v1027_v55  ;;  %1265 = vxpose.xlu0.b32.start.end [1/1] (short) (narrow) %v1059_v58, 8 }
 0x31f   : > { %3339 = vxpose.xlu1.b32.start.end [1/1] (short) (narrow) %v3338_v59, 8 }
 0x320   : > { %v1060_v60 = vpop.trf.xlu1  ;;  %v1353_v61 = vpop.trf.xlu0 }
 0x321   : > { %1297 = vxpose.xlu0.b32.start.end [1/1] (short) (narrow) %v1060_v60, 8  ;;  %v1401_v62 = vpack.c.bf16 %v1353_v61, %v1353_v61 }
 0x323   : > { %1369 = vxpose.xlu1.b32.start.end [1/1] (short) (narrow) %v948_v45, 32  ;;  %v1487_v63 = vsel %vm1485_vm3, %v1401_v62, 0 }
 0x324   : > { %v1354_v0 = vpop.trf.xlu0  ;;  %3092 = vmatpush3.bf16.msra.mxu1 %v1487_v63 }
 0x325   : > { %v1402_v1 = vpack.c.bf16 %v1354_v0, %v1354_v0  ;;  %3103 = vmatprep.subr.bf16.mxu1 %v3668_v18 }
 0x327   : > { %v1533_v4 = vsel %vm1485_vm3, %v1402_v1, 0 }
 0x328   : > { %3098 = vmatpush3.bf16.msra.mxu0 %v1533_v4  ;;  %v1355_v5 = vpop.trf.xlu0 }
 0x329   : > { %3109 = vmatprep.subr.bf16.mxu0 %v3668_v18  ;;  %v1403_v6 = vpack.c.bf16 %v1355_v5, %v1355_v5 }
 0x32b   : > { %v1579_v9 = vsel %vm1485_vm3, %v1403_v6, 0 }
 0x32c   : > { %v1356_v7 = vpop.trf.xlu0 }
 0x32d   : > { %v1404_v10 = vpack.c.bf16 %v1356_v7, %v1356_v7 }
 0x32f   : > { %v1625_v13 = vsel %vm1485_vm3, %v1404_v10, 0 }
 0x330   : > { %1233 = vxpose.xlu1.b32.start.end [1/1] (short) (narrow) %v1058_v56, 8 }
 0x38d   : > { %v1089_v8 = vpop.trf.xlu1 }
 0x38e   : > { %v1329_v11 = vpack.c.bf16 %v1089_v8, %v1089_v8 }
 0x390   : > { %3094 = vmatmul.mubr.msk.bf16.vlgmr.msra.gmra.mxu1 %vm1481_vm4, %v1329_v11 }
 0x391   : > { %v1121_v12 = vpop.trf.xlu0  ;;  %3104 = vmatpush3.bf16.msra.mxu1 %v1579_v9  ;;  %3105 = vmatprep.mubr.msk.bf16.mxu1 %vm3669_vm2, %v3668_v18 }
 0x392   : > { %v1330_v14 = vpack.c.bf16 %v1121_v12, %v1121_v12  ;;  %3115 = vmatprep.subr.bf16.mxu1 %v3668_v18 }
 0x394   : > { %3100 = vmatmul.mubr.msk.bf16.vlgmr.msra.gmra.mxu0 %vm1481_vm4, %v1330_v14 }
 0x395   : > { %3110 = vmatpush3.bf16.msra.mxu0 %v1625_v13  ;;  %3111 = vmatprep.mubr.msk.bf16.mxu0 %vm3669_vm2, %v3668_v18  ;;  %v1217_v23 = vpop.trf.xlu0 }
 0x396   : > { %3121 = vmatprep.subr.bf16.mxu0 %v3668_v18  ;;  %v1333_v27 = vpack.c.bf16 %v1217_v23, %v1217_v23 }
 0x399   : > { %v1281_v31 = vpop.trf.xlu0 }
 0x39a   : > { %v1335_v35 = vpack.c.bf16 %v1281_v31, %v1281_v31 }
 0x39b   : > { %v3340_v15 = vpop.trf.xlu1 }
 0x39c   : > { %v3344_v16 = vunpack.i.h.bf16 %v3340_v15  ;;  %v3341_v17 = vunpack.i.l.bf16 %v3340_v15 }
 0x39d   : > { %v1313_v39 = vpop.trf.xlu0 }
 0x39e   : > { %v1332_v19 = vpack.c.bf16 %v3344_v16, %v3344_v16  ;;  %v1331_v20 = vpack.c.bf16 %v3341_v17, %v3341_v17  ;;  %v1336_v40 = vpack.c.bf16 %v1313_v39, %v1313_v39 }
 0x39f   : > { %v1385_v21 = vpop.trf.xlu1 }
 0x3a0   : > { %v1405_v22 = vpack.c.bf16 %v1385_v21, %v1385_v21  ;;  %3106 = vmatmul.mubr.msk.bf16.vlgmr.msra.gmra.mxu1 %vm1481_vm4, %v1331_v20  ;;  %3112 = vmatmul.mubr.msk.bf16.vlgmr.msra.gmra.mxu0 %vm1481_vm4, %v1332_v19 }
 0x3a1   : > { %3117 = vmatprep.mubr.msk.bf16.mxu1 %vm3669_vm2, %v3668_v18  ;;  %3123 = vmatprep.mubr.msk.bf16.mxu0 %vm3669_vm2, %v3668_v18 }
 0x3a2   : > { %v1671_v24 = vsel %vm1485_vm3, %v1405_v22, 0 }
 0x3a3   : > { %v1386_v25 = vpop.trf.xlu1  ;;  %3116 = vmatpush3.bf16.msra.mxu1 %v1671_v24 }
 0x3a4   : > { %v1406_v26 = vpack.c.bf16 %v1386_v25, %v1386_v25  ;;  %3127 = vmatprep.subr.bf16.mxu1 %v3668_v18 }
 0x3a6   : > { %v1717_v28 = vsel %vm1485_vm3, %v1406_v26, 0 }
 0x3a7   : > { %v1387_v29 = vpop.trf.xlu1  ;;  %3122 = vmatpush3.bf16.msra.mxu0 %v1717_v28 }
 0x3a8   : > { %v1407_v30 = vpack.c.bf16 %v1387_v29, %v1387_v29  ;;  %3118 = vmatmul.mubr.msk.bf16.vlgmr.msra.gmra.mxu1 %vm1481_vm4, %v1333_v27  ;;  %3133 = vmatprep.subr.bf16.mxu0 %v3668_v18 }
 0x3a9   : > { %3129 = vmatprep.mubr.msk.bf16.mxu1 %vm3669_vm2, %v3668_v18 }
 0x3aa   : > { %v1763_v32 = vsel %vm1485_vm3, %v1407_v30, 0 }
 0x3ab   : > { %v1388_v33 = vpop.trf.xlu1  ;;  %3128 = vmatpush3.bf16.msra.mxu1 %v1763_v32 }
 0x3ac   : > { %v1408_v34 = vpack.c.bf16 %v1388_v33, %v1388_v33  ;;  %3139 = vmatprep.subr.bf16.mxu1 %v3668_v18 }
 0x3ae   : > { %v1809_v37 = vsel %vm1485_vm3, %v1408_v34, 0 }
 0x3af   : > { %v1249_v36 = vpop.trf.xlu1 }
 0x3b0   : > { %v1334_v38 = vpack.c.bf16 %v1249_v36, %v1249_v36  ;;  %3130 = vmatmul.mubr.msk.bf16.vlgmr.msra.gmra.mxu1 %vm1481_vm4, %v1335_v35 }
 0x3b1   : > { %3141 = vmatprep.mubr.msk.bf16.mxu1 %vm3669_vm2, %v3668_v18 }
 0x3b2   : > { %3124 = vmatmul.mubr.msk.bf16.vlgmr.msra.gmra.mxu0 %vm1481_vm4, %v1334_v38 }
 0x3b3   : > { %3134 = vmatpush3.bf16.msra.mxu0 %v1809_v37  ;;  %3135 = vmatprep.mubr.msk.bf16.mxu0 %vm3669_vm2, %v3668_v18 }
 0x3b4   : > { %3145 = vmatprep.subr.bf16.mxu0 %v3668_v18 }
 0x3ba   : > { %3136 = vmatmul.mubr.msk.bf16.vlgmr.msra.gmra.mxu0 %vm1481_vm4, %v1336_v40 }
 0x3bb   : > { %3147 = vmatprep.mubr.msk.bf16.mxu0 %vm3669_vm2, %v3668_v18 }
 0x450   : > { %v1523_v41 = vpop.f32.mrf.mxu1 }
 0x451   : > { %v1851_v42 = vsel %vm1481_vm4, %v1523_v41, -inf }
 0x452   : > { %1852 = vmax.xlane.f32.xlu0 %v1851_v42  ;;  %v3095_v43 = vpop.f32.mrf.mxu1 }
 0x454   : > { %v1569_v44 = vpop.f32.mrf.mxu0  ;;  %v1526_v45 = vpop.f32.mrf.mxu1 }
 0x455   : > { %v1854_v46 = vsel %vm1481_vm4, %v1569_v44, -inf }
 0x456   : > { %1855 = vmax.xlane.f32.xlu1 %v1854_v46  ;;  %v3096_v47 = vpop.f32.mrf.mxu1  ;;  %v3101_v49 = vpop.f32.mrf.mxu0 }
 0x458   : > { %v1572_v51 = vpop.f32.mrf.mxu0 }
 0x45a   : > { %v3102_v52 = vpop.f32.mrf.mxu0 }
 0x460   : > { %v1615_v53 = vpop.f32.mrf.mxu1  ;;  %v1661_v54 = vpop.f32.mrf.mxu0 }
 0x461   : > { %v1857_v55 = vsel %vm1481_vm4, %v1615_v53, -inf  ;;  %v1860_v56 = vsel %vm1481_vm4, %v1661_v54, -inf }
 0x462   : > { %v3107_v57 = vpop.f32.mrf.mxu1  ;;  %1858 = vmax.xlane.f32.xlu1 %v1857_v55  ;;  %1861 = vmax.xlane.f32.xlu0 %v1860_v56  ;;  %v3113_v58 = vpop.f32.mrf.mxu0 }
 0x464   : > { %v1618_v59 = vpop.f32.mrf.mxu1  ;;  %v1664_v60 = vpop.f32.mrf.mxu0 }
 0x466   : > { %v3108_v61 = vpop.f32.mrf.mxu1  ;;  %v3114_v62 = vpop.f32.mrf.mxu0 }
 0x468   : > { %v1707_v63 = vpop.f32.mrf.mxu1 }
 0x469   : > { %v1863_v0 = vsel %vm1481_vm4, %v1707_v63, -inf }
 0x46a   : > { %v3119_v1 = vpop.f32.mrf.mxu1  ;;  %1864 = vmax.xlane.f32.xlu1 %v1863_v0 }
 0x46c   : > { %v1710_v4 = vpop.f32.mrf.mxu1 }
 0x46e   : > { %v3120_v5 = vpop.f32.mrf.mxu1 }
 0x470   : > { %v1799_v6 = vpop.f32.mrf.mxu1 }
 0x471   : > { %v1869_v7 = vsel %vm1481_vm4, %v1799_v6, -inf }
 0x472   : > { %v3131_v8 = vpop.f32.mrf.mxu1  ;;  %1870 = vmax.xlane.f32.xlu1 %v1869_v7  ;;  %v1753_v9 = vpop.f32.mrf.mxu0 }
 0x473   : > { %v1866_v10 = vsel %vm1481_vm4, %v1753_v9, -inf }
 0x474   : > { %v1802_v11 = vpop.f32.mrf.mxu1  ;;  %1867 = vmax.xlane.f32.xlu0 %v1866_v10  ;;  %v3125_v12 = vpop.f32.mrf.mxu0 }
 0x476   : > { %v1756_v13 = vpop.f32.mrf.mxu0  ;;  %v3132_v14 = vpop.f32.mrf.mxu1 }
 0x478   : > { %v3126_v15 = vpop.f32.mrf.mxu0 }
 0x47a   : > { %v1845_v16 = vpop.f32.mrf.mxu0 }
 0x47b   : > { %v1872_v17 = vsel %vm1481_vm4, %v1845_v16, -inf }
 0x47c   : > { %1873 = vmax.xlane.f32.xlu0 %v1872_v17  ;;  %v3137_v19 = vpop.f32.mrf.mxu0 }
 0x47e   : > { %v1848_v20 = vpop.f32.mrf.mxu0 }
 0x480   : > { %v3138_v21 = vpop.f32.mrf.mxu0 }
 0x4db   : > { %v1853_v22 = vpop.xlane.xlu0 %1852 }
 0x4dc   : > { %v1875_v23 = vsub.f32 %v1523_v41, %v1853_v22 }
 0x4de   : > { %v1883_v24 = vmul.f32 1.442695, %v1875_v23 }
 0x4df   : > { %v1856_v25 = vpop.xlane.xlu1 %1855 }
 0x4e0   : > { %3376 = vpow2.f32 %v1883_v24  ;;  %v1876_v26 = vsub.f32 %v1569_v44, %v1856_v25 }
 0x4e2   : > { %v1885_v27 = vmul.f32 1.442695, %v1876_v26 }
 0x4e4   : > { %3378 = vpow2.f32 %v1885_v27 }
 0x4eb   : > { %v1859_v28 = vpop.xlane.xlu1 %1858  ;;  %v1862_v29 = vpop.xlane.xlu0 %1861 }
 0x4ec   : > { %v1877_v30 = vsub.f32 %v1615_v53, %v1859_v28  ;;  %v1878_v31 = vsub.f32 %v1661_v54, %v1862_v29 }
 0x4ed   : > { %v3377_v32 = vpop.eup %3376 }
 0x4ee   : > { %v1887_v33 = vmul.f32 1.442695, %v1877_v30  ;;  %v1889_v34 = vmul.f32 1.442695, %v1878_v31  ;;  %v1899_v35 = vsel %vm1481_vm4, %v3377_v32, 0.0 }
 0x4ef   : > { %1900 = vadd.xlane.f32.xlu1 %v1899_v35 }
 0x4f0   : > { %3380 = vpow2.f32 %v1887_v33 }
 0x4f1   : > { %v3379_v36 = vpop.eup %3378  ;;  %3382 = vpow2.f32 %v1889_v34 }
 0x4f2   : > { %v1902_v37 = vsel %vm1481_vm4, %v3379_v36, 0.0 }
 0x4f3   : > { %v1865_v38 = vpop.xlane.xlu1 %1864  ;;  %1903 = vadd.xlane.f32.xlu0 %v1902_v37 }
 0x4f4   : > { %v1879_v39 = vsub.f32 %v1707_v63, %v1865_v38 }
 0x4f6   : > { %v1891_v40 = vmul.f32 1.442695, %v1879_v39 }
 0x4f8   : > { %3384 = vpow2.f32 %v1891_v40 }
 0x4fb   : > { %v1871_v41 = vpop.xlane.xlu1 %1870 }
 0x4fc   : > { %v1881_v42 = vsub.f32 %v1799_v6, %v1871_v41 }
 0x4fd   : > { %v3381_v43 = vpop.eup %3380  ;;  %v1868_v44 = vpop.xlane.xlu0 %1867 }
 0x4fe   : > { %v3383_v45 = vpop.eup %3382  ;;  %v1895_v46 = vmul.f32 1.442695, %v1881_v42  ;;  %v1880_v47 = vsub.f32 %v1753_v9, %v1868_v44  ;;  %v1905_v49 = vsel %vm1481_vm4, %v3381_v43, 0.0 }
 0x4ff   : > { %1906 = vadd.xlane.f32.xlu1 %v1905_v49  ;;  %v1908_v51 = vsel %vm1481_vm4, %v3383_v45, 0.0 }
 0x500   : > { %3386 = vpow2.f32 %v1895_v46  ;;  %v1893_v52 = vmul.f32 1.442695, %v1880_v47  ;;  %1909 = vadd.xlane.f32.xlu0 %v1908_v51 }
 0x502   : > { %3388 = vpow2.f32 %v1893_v52 }
 0x505   : > { %v3385_v53 = vpop.eup %3384  ;;  %v1874_v54 = vpop.xlane.xlu0 %1873 }
 0x506   : > { %v1882_v55 = vsub.f32 %v1845_v16, %v1874_v54  ;;  %v1911_v56 = vsel %vm1481_vm4, %v3385_v53, 0.0 }
 0x507   : > { %1912 = vadd.xlane.f32.xlu1 %v1911_v56 }
 0x508   : > { %v1897_v57 = vmul.f32 1.442695, %v1882_v55 }
 0x50a   : > { %3390 = vpow2.f32 %v1897_v57 }
 0x50d   : > { %v4119_v58 = vpop.eup %3386 }
 0x50e   : > { %v1917_v59 = vsel %vm1481_vm4, %v4119_v58, 0.0 }
 0x50f   : > { %v3389_v60 = vpop.eup %3388  ;;  %1918 = vadd.xlane.f32.xlu1 %v1917_v59  ;;  %v3364_v59 = vld [vmem:[%s4401_s11 + $0x8] sm:$0xff]  }
 0x510   : > { %v1914_v61 = vsel %vm1481_vm4, %v3389_v60, 0.0 }
 0x511   : > { %1915 = vadd.xlane.f32.xlu0 %v1914_v61 }
 0x517   : > { %v4124_v62 = vpop.eup %3390 }
 0x518   : > { %v1920_v63 = vsel %vm1481_vm4, %v4124_v62, 0.0 }
 0x519   : > { %1921 = vadd.xlane.f32.xlu0 %v1920_v63 }
 0x542   : > { %1409 = vxpose.xlu1.b32.start.end [1/1] (short) (narrow) %v4062_v48, 32 }
 0x546   : > { %1441 = vxpose.xlu0.b32.start.end [1/1] (short) (narrow) %v4064_v50, 32 }
 0x578   : > { %v1901_v0 = vpop.xlane.xlu1 %1900 }
 0x579   : > { %3392 = vrcp.f32 %v1901_v0 }
 0x57c   : > { %v1904_v1 = vpop.xlane.xlu0 %1903 }
 0x57d   : > { %3394 = vrcp.f32 %v1904_v1 }
 0x586   : > { %v3393_v4 = vpop.eup %3392 }
 0x587   : > { %v1931_v5 = vmul.f32 %v3393_v4, %v3377_v32 }
 0x588   : > { %v1907_v48 = vpop.xlane.xlu1 %1906 }
 0x589   : > { %v1939_v6 = vpack.c.bf16 %v1931_v5, %v1931_v5  ;;  %3396 = vrcp.f32 %v1907_v48  ;;  %v1910_v50 = vpop.xlane.xlu0 %1909 }
 0x58a   : > { %v3395_v7 = vpop.eup %3394  ;;  %3398 = vrcp.f32 %v1910_v50 }
 0x58b   : > { %v1951_v8 = vsel %vm1481_vm4, %v1939_v6, 0  ;;  %v1932_v9 = vmul.f32 %v3395_v7, %v3379_v36 }
 0x58c   : > { %3140 = vmatpush3.bf16.xpose.msra.mxu1 %v1951_v8 }
 0x58d   : > { %v1940_v10 = vpack.c.bf16 %v1932_v9, %v1932_v9  ;;  %3151 = vmatprep.subr.bf16.mxu1 %v3668_v18 }
 0x58f   : > { %v1997_v11 = vsel %vm1481_vm4, %v1940_v10, 0 }
 0x590   : > { %3146 = vmatpush3.bf16.xpose.msra.mxu0 %v1997_v11  ;;  %v1913_v12 = vpop.xlane.xlu1 %1912 }
 0x591   : > { %3157 = vmatprep.subr.bf16.mxu0 %v3668_v18  ;;  %3400 = vrcp.f32 %v1913_v12  ;;  %v3365_v12 = vld [vmem:[%s4402_s15] sm:$0xff]  }
 0x596   : > { %v3397_v14 = vpop.eup %3396 }
 0x597   : > { %v1933_v16 = vmul.f32 %v3397_v14, %v3381_v43  ;;  %v3399_v17 = vpop.eup %3398 }
 0x598   : > { %v1919_v15 = vpop.xlane.xlu1 %1918  ;;  %v1934_v21 = vmul.f32 %v3399_v17, %v3383_v45 }
 0x599   : > { %v1941_v20 = vpack.c.bf16 %v1933_v16, %v1933_v16 }
 0x59a   : > { %v1916_v13 = vpop.xlane.xlu0 %1915  ;;  %v1942_v26 = vpack.c.bf16 %v1934_v21, %v1934_v21 }
 0x59b   : > { %3402 = vrcp.f32 %v1916_v13  ;;  %v2043_v25 = vsel %vm1481_vm4, %v1941_v20, 0 }
 0x59c   : > { %3404 = vrcp.f32 %v1919_v15  ;;  %v2089_v32 = vsel %vm1481_vm4, %v1942_v26, 0 }
 0x59e   : > { %v3401_v22 = vpop.eup %3400 }
 0x59f   : > { %v1935_v27 = vmul.f32 %v3401_v22, %v3385_v53 }
 0x5a1   : > { %v1943_v33 = vpack.c.bf16 %v1935_v27, %v1935_v27 }
 0x5a2   : > { %v1922_v19 = vpop.xlane.xlu0 %1921 }
 0x5a3   : > { %3406 = vrcp.f32 %v1922_v19  ;;  %v2135_v38 = vsel %vm1481_vm4, %v1943_v33, 0 }
 0x5a8   : > { %v3403_v28 = vpop.eup %3402 }
 0x5a9   : > { %v1936_v34 = vmul.f32 %v3403_v28, %v3389_v60  ;;  %v3405_v35 = vpop.eup %3404 }
 0x5aa   : > { %v1937_v40 = vmul.f32 %v3405_v35, %v4119_v58 }
 0x5ab   : > { %v1944_v39 = vpack.c.bf16 %v1936_v34, %v1936_v34 }
 0x5ac   : > { %v1945_v47 = vpack.c.bf16 %v1937_v40, %v1937_v40 }
 0x5ad   : > { %v2181_v45 = vsel %vm1481_vm4, %v1944_v39, 0 }
 0x5ae   : > { %v2227_v52 = vsel %vm1481_vm4, %v1945_v47, 0 }
 0x5b0   : > { %v3407_v41 = vpop.eup %3406 }
 0x5b1   : > { %v1938_v49 = vmul.f32 %v3407_v41, %v4124_v62 }
 0x5b3   : > { %v1946_v54 = vpack.c.bf16 %v1938_v49, %v1938_v49 }
 0x5b5   : > { %v2273_v55 = vsel %vm1481_vm4, %v1946_v54, 0 }
 0x5be   : > { %v1425_v23 = vpop.trf.xlu1 }
 0x5bf   : > { %v1473_v24 = vpack.c.bf16 %v1425_v23, %v1425_v23 }
 0x5c1   : > { %3142 = vmatmul.mubr.msk.bf16.vlgmr.msra.gmra.mxu1 %vm1481_vm4, %v1473_v24 }
 0x5c2   : > { %3152 = vmatpush3.bf16.xpose.msra.mxu1 %v2043_v25  ;;  %v1426_v29 = vpop.trf.xlu1  ;;  %3153 = vmatprep.mubr.msk.bf16.mxu1 %vm3669_vm2, %v3668_v18  ;;  %v1457_v31 = vpop.trf.xlu0 }
 0x5c3   : > { %v1474_v30 = vpack.c.bf16 %v1426_v29, %v1426_v29  ;;  %3163 = vmatprep.subr.bf16.mxu1 %v3668_v18  ;;  %v1477_v46 = vpack.c.bf16 %v1457_v31, %v1457_v31 }
 0x5c5   : > { %3148 = vmatmul.mubr.msk.bf16.vlgmr.msra.gmra.mxu0 %vm1481_vm4, %v1474_v30 }
 0x5c6   : > { %3158 = vmatpush3.bf16.xpose.msra.mxu0 %v2089_v32  ;;  %v1427_v36 = vpop.trf.xlu1  ;;  %3159 = vmatprep.mubr.msk.bf16.mxu0 %vm3669_vm2, %v3668_v18  ;;  %v1458_v43 = vpop.trf.xlu0 }
 0x5c7   : > { %v1475_v37 = vpack.c.bf16 %v1427_v36, %v1427_v36  ;;  %3169 = vmatprep.subr.bf16.mxu0 %v3668_v18  ;;  %v1478_v53 = vpack.c.bf16 %v1458_v43, %v1458_v43 }
 0x5c9   : > { %3154 = vmatmul.mubr.msk.bf16.vlgmr.msra.gmra.mxu1 %vm1481_vm4, %v1475_v37 }
 0x5ca   : > { %3164 = vmatpush3.bf16.xpose.msra.mxu1 %v2135_v38  ;;  %v1428_v42 = vpop.trf.xlu1  ;;  %3165 = vmatprep.mubr.msk.bf16.mxu1 %vm3669_vm2, %v3668_v18  ;;  %v1459_v51 = vpop.trf.xlu0  ;;  %v2986_v38 = vld [vmem:[%s4404_s1] ss:$0 sm:$0xff] }
 0x5cb   : > { %v1476_v44 = vpack.c.bf16 %v1428_v42, %v1428_v42  ;;  %3175 = vmatprep.subr.bf16.mxu1 %v3668_v18  ;;  %v1479_v56 = vpack.c.bf16 %v1459_v51, %v1459_v51 }
 0x5cd   : > { %3160 = vmatmul.mubr.msk.bf16.vlgmr.msra.gmra.mxu0 %vm1481_vm4, %v1476_v44 }
 0x5ce   : > { %3170 = vmatpush3.bf16.xpose.msra.mxu0 %v2181_v45  ;;  %3171 = vmatprep.mubr.msk.bf16.mxu0 %vm3669_vm2, %v3668_v18  ;;  %v1460_v57 = vpop.trf.xlu0 }
 0x5cf   : > { %3181 = vmatprep.subr.bf16.mxu0 %v3668_v18  ;;  %v1480_v58 = vpack.c.bf16 %v1460_v57, %v1460_v57 }
 0x5d1   : > { %3166 = vmatmul.mubr.msk.bf16.vlgmr.msra.gmra.mxu1 %vm1481_vm4, %v1477_v46 }
 0x5d2   : > { %3176 = vmatpush3.bf16.xpose.msra.mxu1 %v2227_v52  ;;  %3177 = vmatprep.mubr.msk.bf16.mxu1 %vm3669_vm2, %v3668_v18 }
 0x5d3   : > { %3187 = vmatprep.subr.bf16.mxu1 %v3668_v18 }
 0x5d5   : > { %3172 = vmatmul.mubr.msk.bf16.vlgmr.msra.gmra.mxu0 %vm1481_vm4, %v1478_v53 }
 0x5d6   : > { %3182 = vmatpush3.bf16.xpose.msra.mxu0 %v2273_v55  ;;  %3183 = vmatprep.mubr.msk.bf16.mxu0 %vm3669_vm2, %v3668_v18 }
 0x5d7   : > { %3195 = vmatprep.subr.bf16.mxu0 %v3668_v18 }
 0x5d9   : > { %3178 = vmatmul.mubr.msk.bf16.vlgmr.msra.gmra.mxu1 %vm1481_vm4, %v1479_v56 }
 0x5da   : > { %3191 = vmatprep.mubr.msk.bf16.mxu1 %vm3669_vm2, %v3668_v18  ;;  %3188 = vmatpush3.bf16.msra.mxu1 %v3364_v59  ;;  %v3366_v59 = vld [vmem:[%s4405_s27 + $0x8] sm:$0xff]  }
 0x5db   : > { %3189 = vmatprep.subr.bf16.mxu1 %v3668_v18 }
 0x5dd   : > { %3184 = vmatmul.mubr.msk.bf16.vlgmr.msra.gmra.mxu0 %vm1481_vm4, %v1480_v58 }
 0x5de   : > { %3199 = vmatprep.mubr.msk.bf16.mxu0 %vm3669_vm2, %v3668_v18  ;;  %3190 = vmatpush3.bf16.msra.mxu1 %v3365_v12 }
 0x5df   : > { %3203 = vmatprep.subr.bf16.mxu1 %v3668_v18  ;;  %3196 = vmatpush3.bf16.msra.mxu0 %v3366_v59 }
 0x5e0   : > { %3197 = vmatprep.subr.bf16.mxu0 %v3668_v18 }
 0x681   : > { %v1987_v60 = vpop.f32.mrf.mxu1 }
 0x683   : > { %v3143_v61 = vpop.f32.mrf.mxu1 }
 0x685   : > { %v1990_v62 = vpop.f32.mrf.mxu1  ;;  %v2033_v63 = vpop.f32.mrf.mxu0 }
 0x687   : > { %v3144_v0 = vpop.f32.mrf.mxu1  ;;  %v3149_v1 = vpop.f32.mrf.mxu0 }
 0x689   : > { %v2036_v4 = vpop.f32.mrf.mxu0  ;;  %v2079_v5 = vpop.f32.mrf.mxu1 }
 0x68b   : > { %v3150_v6 = vpop.f32.mrf.mxu0  ;;  %v3155_v7 = vpop.f32.mrf.mxu1 }
 0x68c   : > { %v2990_v7 = vld [vmem:[%s760_s12] ss:$0 sm:$0xff] }
 0x68d   : > { %v2082_v8 = vpop.f32.mrf.mxu1  ;;  %v2125_v9 = vpop.f32.mrf.mxu0 }
 0x68f   : > { %v3156_v10 = vpop.f32.mrf.mxu1  ;;  %v3161_v11 = vpop.f32.mrf.mxu0 }
 0x690   : > { %v2991_v11 = vld [vmem:[%s763_s17] ss:$0 sm:$0xff] }
 0x691   : > { %v2128_v48 = vpop.f32.mrf.mxu0  ;;  %v2171_v50 = vpop.f32.mrf.mxu1 }
 0x692   : > { %v3345_v13 = vpack.i.bf16 %v2171_v50, %v1987_v60  ;;  %v3367_v60 = vld [vmem:[%s4406_s25] sm:$0xff]  }
 0x693   : > { %v3162_v14 = vpop.f32.mrf.mxu0  ;;  %v3167_v15 = vpop.f32.mrf.mxu1  ;;  %3198 = vmatpush3.bf16.msra.mxu0 %v3367_v60 }
 0x694   : > { %3346 = vxpose.xlu0.b32.start [1/4] (short) (narrow) %v3345_v13, 8  ;;  %v3368_v14 = vld [vmem:[%s4005_s30 + $0x18] sm:$0xff]   ;;  %v3369_v15 = vld [vmem:[%s4005_s30 + $0x10] sm:$0xff]  }
 0x695   : > { %v2174_v16 = vpop.f32.mrf.mxu1  ;;  %v2217_v17 = vpop.f32.mrf.mxu0 }
 0x696   : > { %v3347_v19 = vpack.i.bf16 %v2217_v17, %v2033_v63  ;;  %v3370_v16 = vld [vmem:[%s4005_s30 + $0x8] sm:$0xff]   ;;  %v3371_v17 = vld [vmem:[%s4005_s30] sm:$0xff]  }
 0x697   : > { %v3168_v20 = vpop.f32.mrf.mxu1  ;;  %v3173_v21 = vpop.f32.mrf.mxu0 }
 0x698   : > { %3348 = vxpose.xlu0.b32.cont [2/4] (short) (narrow) %v3347_v19, 8  ;;  %v2992_v19 = vld [vmem:[%s766_s4] ss:$0 sm:$0xff] }
 0x699   : > { %v2220_v22 = vpop.f32.mrf.mxu0  ;;  %v2263_v23 = vpop.f32.mrf.mxu1 }
 0x69a   : > { %v3349_v24 = vpack.i.bf16 %v2263_v23, %v2079_v5 }
 0x69b   : > { %v3174_v25 = vpop.f32.mrf.mxu0  ;;  %v3179_v26 = vpop.f32.mrf.mxu1 }
 0x69c   : > { %3350 = vxpose.xlu0.b32.cont [3/4] (short) (narrow) %v3349_v24, 8 }
 0x69d   : > { %v2266_v27 = vpop.f32.mrf.mxu1  ;;  %v2309_v28 = vpop.f32.mrf.mxu0 }
 0x69e   : > { %v3351_v29 = vpack.i.bf16 %v2309_v28, %v2125_v9 }
 0x69f   : > { %v3180_v30 = vpop.f32.mrf.mxu1  ;;  %v3185_v31 = vpop.f32.mrf.mxu0 }
 0x6a0   : > { %3352 = vxpose.xlu0.b32.end [4/4] (short) (narrow) %v3351_v29, 8 }
 0x6a1   : > { %v2312_v32 = vpop.f32.mrf.mxu0 }
 0x6a3   : > { %v3186_v33 = vpop.f32.mrf.mxu0 }
 0x710   : > { %v3353_v34 = vpop.trf.xlu0 }
 0x711   : > { %v3357_v35 = vunpack.i.h.bf16 %v3353_v34  ;;  %v3354_v36 = vunpack.i.l.bf16 %v3353_v34 }
 0x713   : > { %v2379_v37 = vpack.c.bf16 %v3357_v35, %v3354_v36 }
 0x715   : > { %3192 = vmatmul.mubr.msk.bf16.vlgmr.msra.gmra.mxu1 %vm790_vm1, %v2379_v37 }
 0x716   : > { %3211 = vmatprep.mubr.msk.bf16.mxu1 %vm3669_vm2, %v3668_v18  ;;  %3204 = vmatpush3.bf16.msra.mxu1 %v3368_v14 }
 0x717   : > { %3205 = vmatprep.subr.bf16.mxu1 %v3668_v18 }
 0x71a   : > { %3206 = vmatpush3.bf16.msra.mxu1 %v3369_v15 }
 0x71b   : > { %3207 = vmatprep.subr.bf16.mxu1 %v3668_v18 }
 0x71e   : > { %3208 = vmatpush3.bf16.msra.mxu1 %v3370_v16 }
 0x71f   : > { %3209 = vmatprep.subr.bf16.mxu1 %v3668_v18 }
 0x722   : > { %3210 = vmatpush3.bf16.msra.mxu1 %v3371_v17 }
 0x7d5   : > { %v2440_v39 = vpop.f32.mrf.mxu1 }
 0x7d6   : > { %v2441_v40 = vadd.f32 %v2986_v38, %v2440_v39 }
 0x7d7   : > { %v3193_v41 = vpop.f32.mrf.mxu1 }
 0x7d8   : > { %v4187_v42 = vadd.f32 %v2441_v40, %v4014_v2 }
 0x7d9   : > { %v2443_v43 = vpop.f32.mrf.mxu1 }
 0x7da   : > { %v2444_v44 = vadd.f32 %v2986_v38, %v2443_v43  ;;  %v2451_v45 = vsel %vm790_vm1, %v4187_v42, 0.0  ;;  %v2996_v38 = vld [vmem:[%s774_s3] ss:$0 sm:$0xff] }
 0x7db   : > { %2452 = vadd.xlane.f32.xlu1 %v2451_v45  ;;  %v3194_v46 = vpop.f32.mrf.mxu1 }
 0x7dc   : > { %v4192_v47 = vadd.f32 %v2444_v44, %v4016_v3 }
 0x7de   : > { %v2454_v49 = vsel %vm790_vm1, %v4192_v47, 0.0 }
 0x7df   : > { %2455 = vadd.xlane.f32.xlu0 %v2454_v49 }
 0x864   : > { %v2453_v51 = vpop.xlane.xlu1 %2452 }
 0x865   : > { %v2457_v52 = vmul.f32 0.03125, %v2453_v51 }
 0x867   : > { %v2459_v2 = vsub.f32 %v4187_v42, %v2457_v52 }
 0x868   : > { %v2456_v53 = vpop.xlane.xlu0 %2455 }
 0x869   : > { %v2458_v54 = vmul.f32 0.03125, %v2456_v53  ;;  %v2461_v55 = vmul.f32 %v2459_v2, %v2459_v2 }
 0x86b   : > { %v2460_v56 = vsub.f32 %v4192_v47, %v2458_v54  ;;  %v2463_v57 = vsel %vm790_vm1, %v2461_v55, 0.0 }
 0x86c   : > { %2464 = vadd.xlane.f32.xlu1 %v2463_v57 }
 0x86d   : > { %v2462_v58 = vmul.f32 %v2460_v56, %v2460_v56 }
 0x86f   : > { %v2466_v3 = vsel %vm790_vm1, %v2462_v58, 0.0 }
 0x870   : > { %2467 = vadd.xlane.f32.xlu1 %v2466_v3 }
 0x8f5   : > { %v2465_v61 = vpop.xlane.xlu1 %2464 }
 0x8f6   : > { %v2469_v62 = vmul.f32 0.03125, %v2465_v61 }
 0x8f8   : > { %v2471_v63 = vadd.f32 1e-05, %v2469_v62 }
 0x8f9   : > { %v2468_v0 = vpop.xlane.xlu1 %2467 }
 0x8fa   : > { %3408 = vrsqrt.f32 %v2471_v63  ;;  %v2470_v1 = vmul.f32 0.03125, %v2468_v0 }
 0x8fc   : > { %v2472_v4 = vadd.f32 1e-05, %v2470_v1 }
 0x8fe   : > { %3410 = vrsqrt.f32 %v2472_v4 }
 0x907   : > { %v3409_v5 = vpop.eup %3408 }
 0x908   : > { %v2475_v6 = vmul.f32 %v3409_v5, %v2459_v2 }
 0x90a   : > { %v2483_v10 = vmul.f32 %v2990_v7, %v2475_v6 }
 0x90b   : > { %v3411_v8 = vpop.eup %3410 }
 0x90c   : > { %v2476_v9 = vmul.f32 %v3411_v8, %v2460_v56  ;;  %v2491_v50 = vadd.f32 %v2991_v11, %v2483_v10 }
 0x90e   : > { %v2484_v48 = vmul.f32 %v2990_v7, %v2476_v9 }
 0x910   : > { %v2492_v12 = vadd.f32 %v2991_v11, %v2484_v48 }
 0x912   : > { %v2493_v13 = vpack.c.bf16 %v2492_v12, %v2491_v50 }
 0x914   : > { %3200 = vmatmul.mubr.msk.bf16.vlgmr.msra.gmra.mxu0 %vm790_vm1, %v2493_v13 }
 0x9d4   : > { %v2554_v20 = vpop.f32.mrf.mxu0 }
 0x9d5   : > { %v2555_v21 = vadd.f32 %v2992_v19, %v2554_v20 }
 0x9d6   : > { %v3201_v22 = vpop.f32.mrf.mxu0 }
 0x9d7   : > { %v2561_v23 = vsub.f32 0.0, %v2555_v21 }
 0x9d8   : > { %v2557_v24 = vpop.f32.mrf.mxu0 }
 0x9d9   : > { %v2563_v25 = vmul.f32 1.442695, %v2561_v23  ;;  %v2558_v26 = vadd.f32 %v2992_v19, %v2557_v24 }
 0x9da   : > { %v3202_v27 = vpop.f32.mrf.mxu0 }
 0x9db   : > { %3412 = vpow2.f32 %v2563_v25  ;;  %v2562_v28 = vsub.f32 0.0, %v2558_v26 }
 0x9dd   : > { %v2565_v29 = vmul.f32 1.442695, %v2562_v28 }
 0x9df   : > { %3414 = vpow2.f32 %v2565_v29 }
 0x9e8   : > { %v3413_v18 = vpop.eup %3412 }
 0x9e9   : > { %v2567_v30 = vadd.f32 1.0, %v3413_v18 }
 0x9eb   : > { %3416 = vrcp.f32 %v2567_v30 }
 0x9ec   : > { %v3415_v31 = vpop.eup %3414 }
 0x9ed   : > { %v2568_v32 = vadd.f32 1.0, %v3415_v31 }
 0x9ef   : > { %3418 = vrcp.f32 %v2568_v32 }
 0x9f8   : > { %v3417_v33 = vpop.eup %3416 }
 0x9f9   : > { %v2571_v35 = vmul.f32 %v3417_v33, %v2555_v21 }
 0x9fc   : > { %v3419_v34 = vpop.eup %3418 }
 0x9fd   : > { %v2572_v36 = vmul.f32 %v3419_v34, %v2558_v26 }
 0x9ff   : > { %v2573_v37 = vpack.c.bf16 %v2572_v36, %v2571_v35 }
 0xa01   : > { %3212 = vmatmul.mubr.msk.bf16.vlgmr.msra.gmra.mxu1 %vm2613_vm5, %v2573_v37 }
 0xac1   : > { %v2651_v39 = vpop.f32.mrf.mxu1 }
 0xac2   : > { %v2652_v40 = vadd.f32 %v2996_v38, %v2651_v39 }
 0xac3   : > { %v3213_v41 = vpop.f32.mrf.mxu1 }
 0xac4   : > { %v2658_v43 = vadd.f32 %v2652_v40, %v4187_v42 }
 0xac5   : > { %v2654_v44 = vpop.f32.mrf.mxu1 }
 0xac6   : > { %2660 = vst.msk [vmem:[#allocation2] sm:$0xff] %vm790_vm1, %v2658_v43  ;;  %v2655_v45 = vadd.f32 %v2996_v38, %v2654_v44  ;;  %2665 = sbr.rel (%p3002_p6) target bundleno = 2764 (0xacc), region = 100 }
 0xac7   : > { %v3214_v46 = vpop.f32.mrf.mxu1 }
 0xac8   : > { %v2659_v49 = vadd.f32 %v2655_v45, %v4192_v47 }
 0xaca   : > { %2661 = vst.msk [vmem:[#allocation2 + $0x8] sm:$0xff] %vm790_vm1, %v2659_v49 }
 0xacb   : > { %2666 = vst.msk [vmem:[%s4011_s26] sm:$0xff] %vm790_vm1, %v2658_v43  ;;  %2667 = vst.msk [vmem:[%s4011_s26 + $0x8] sm:$0xff] %vm790_vm1, %v2659_v49 }
 0xacc PF: > { %s4411_s22 = sld [smem:[#allocation17_spill]]  ;;  %s3014_s21 = sshll.u32 %s3648_s20, 8 }
 0xacd   : > { %s4413_s5 = sld [smem:[#allocation43_spill]]  ;;  %s2682_s11 = sshll.u32 %s4011_s26, 4  ;;  %s4249_s11 = int_to_ptr.vmem [resolvable:$true] %s2682_s11 }
 0xace   : > { %s3532_s8 = scalar_lea.vmem %s4249_s11, 256  ;;  %s3670_s20 = smov [#allocation11]  }
 0xacf   : > { %p3533_p13 = scmp.ne.s32.totalorder %s4249_s11, %s3532_s8  ;;  %s3536_s29 = sshll.u32 %s3670_s20, 4  ;;  %s3537_s29 = int_to_ptr.vmem [resolvable:$false] %s3536_s29 }
 0xad0   : > { %s3538_s7 = scalar_lea.vmem %s3537_s29, 512  ;;  %p3539_p7 = scmp.lt.s32.totalorder %s4249_s11, %s3537_s29 }
 0xad1   : > { %p3534_p0 = pnand %p3533_p13, %p3840_p12  ;;  %p3540_p9 = scmp.lt.s32.totalorder %s3538_s7, %s3532_s8 }
 0xad2   : > { %s4414_s19 = sand.u32 1, %s4411_s22  }
 0xad3   : > { %s4246_s28 = scalar_lea.hbm %s4413_s5, %s3014_s21  ;;  %s4253_s15 = scalar_lea.sflag [#allocation5], %s4414_s19 }
 0xad4   : > { %p3535_p1 = pneg %p3534_p0  ;;  %p3541_p10 = por %p3540_p9, %p3539_p7 }
 0xad6   : > { %p3542_p5 = pnand %p3541_p10, %p3535_p1 }
 0xad8   : > { %3545 = shalt.err (!%p3542_p5)
}
 0xad9   : > { %s3546_s26 = scalar_lea.hbm %s4246_s28, 256  ;;  %s3550_s25 = scalar_lea.hbm %s4413_s5, 512 }
 0xada   : > { %p3547_p11 = scmp.ne.s32.totalorder %s4246_s28, %s3546_s26  ;;  %p3551_p8 = scmp.lt.s32.totalorder %s4246_s28, %s4413_s5 }
 0xadb   : > { %p3552_p6 = scmp.lt.s32.totalorder %s3550_s25, %s3546_s26 }
 0xadc   : > { %p3548_p4 = pnand %p3547_p11, %p3840_p12 }
 0xadd   : > { %p3553_p13 = por %p3552_p6, %p3551_p8 }
 0xade   : > { %p3549_p3 = pneg %p3548_p4 }
 0xae0   : > { %p3554_p0 = pnand %p3553_p13, %p3549_p3 }
 0xae2   : > { %3557 = shalt.err (!%p3554_p0)
}
 0xae3   : > { %s3671_s9 = smov 128   ;;  %s3672_s24 = smov 8  }
 0xae4   : > { %3223 = dma.vmem_to_hbm [thread:$0]  (%p3840_p12), %s4249_s11, 256, %s4246_s28, %s4253_s15, %s3671_s9, %s3671_s9, %s3672_s24  }
 0xae5 PF: > { %s4415_s10 = sld [smem:[#allocation23_spill]] }
 0xae6   : > { %s4416_s6 = sld [smem:[#allocation16_spill]] }
 0xaeb   : > { %p3243_p1 = scmp.ge.s32.totalorder %s4415_s10, 2 }
 0xaec   : > { %s2697_s12 = sand.u32 1, %s4416_s6  }
 0xaed   : > { %p3239_p7 = pnand %p3243_p1, %p3850_p2  ;;  %s2698_s14 = scalar_lea.sflag [#allocation5], %s2697_s12 }
 0xaef   : > { %p3240_p9 = pneg %p3239_p7 }
 0xaf1   : > { %3615 = dma.done.wait (%p3240_p9), %s2698_s14, 256  }
 0xaf2   : > { %3617 = vsyncadd (%p3240_p9), %s2698_s14, 4294967040  ;;  %s36_s23 = sadd.s32 1, %s4415_s10   ;;  %s4418_s29 = sld [smem:[#allocation17_spill]] }
 0xaf3   : > { %p33_p10 = scmp.ge.s32.totalorder %s36_s23, 6   ;;  %s4419_s30 = sld [smem:[#allocation18_spill]] }
 0xaf4   : > { %s4420_s15 = sld [smem:[#allocation27_spill]] }
 0xaf5   : > { %s4421_s16 = sld [smem:[#allocation19_spill]] }
 0xaf6   : > { %s4422_s17 = sld [smem:[#allocation20_spill]] }
 0xaf7   : > { %s4423_s18 = sld [smem:[#allocation26_spill]]  ;;  %35 = sbr.rel (!%p33_p10) target bundleno = 28 (0x1c), region = 196 }
 0xaf8   : > { %s4424_s19 = sld [smem:[#allocation21_spill]] }
 0xaf9   : > { %s4425_s20 = sld [smem:[#allocation22_spill]] }
 0xafa   : > { %s4426_s21 = sld [smem:[#allocation24_spill]] }
 0xafb   : > { %s4427_s22 = sld [smem:[#allocation25_spill]] }
 0xafc   :  { %2703 = vsyncpa [#allocation4], 1 }
 0xafd   :  { %2705 = vsyncpa [#allocation4 + $0x1], 1 }
 0xafe   :  { %2706 = vsyncpa [#allocation7], 1 }
 0xaff   :  { %2708 = vsyncpa [#allocation7 + $0x1], 1 }
 0xb00   :  { %2709 = vsyncpa [#allocation10], 1 }
 0xb01   :  { %2711 = vsyncpa [#allocation10 + $0x1], 1 }
 0xb02   :  { %2712 = vsyncpa [#allocation5], 1 }
 0xb03   :  { %2714 = vsyncpa [#allocation5 + $0x1], 1 }

</bundles_post_ra>
